<compile_context>
chip_gen: v6e
topology: v6e:2x2x1
jax: 0.10.0
libtpu: 0.0.40
codegen_flags: <defaults>
</compile_context>

<pallas_src>
import jax
import jax.numpy as jnp
from jax.experimental import pallas as pl
from jax.experimental.pallas import tpu as pltpu


_SMALL_PROBLEM_BYTES = 1 << 20  # below this, plain JAX beats kernel launch cost


def _make_kernel(n_sources):
    def kernel(emb_ref, *refs):
        # emb_ref : (n_sources, E)  -- tiny, resident every grid step
        # refs    : n_sources input blocks (tb, E) then n_sources output blocks
        x_refs = refs[:n_sources]
        o_refs = refs[n_sources:]
        emb = emb_ref[...]                               # (n_sources, E)
        for i in range(n_sources):                       # static unroll
            o_refs[i][...] = x_refs[i][...] + emb[i][None, :]
    return kernel


def _round_up(x, m):
    return ((x + m - 1) // m) * m


def _vmem_budget_bytes():
    """Per-step VMEM budget for user buffers (generation aware)."""
    phys = None
    try:
        info = pltpu.get_tpu_info()
        phys = getattr(info, "vmem_capacity_bytes", None)
    except Exception:
        phys = None
    if not phys:
        phys = 64 << 20            # conservative fallback: v7x per-TC VMEM
    # Tiles past ~1-2K rows give diminishing returns; keep headroom for
    # Mosaic internal scratch, semaphores, and the (double-buffered) table.
    return min(40 << 20, int(phys * 0.6))


def _pick_batch_tile(B, E, n_sources, itemsize, budget_bytes):
    """Largest batch tile (multiple of the dtype's sublane pack) whose
    double-buffered footprint fits the budget; capped so the grid has >= 2
    steps whenever possible (v7x megacore)."""
    pack = max(8, 32 // itemsize)                      # 8 f32 / 16 bf16 / 32 int8
    bytes_per_row = 4 * n_sources * E * itemsize       # 2x dbl-buf x (in + out)
    table_bytes = 2 * n_sources * E * itemsize         # dbl-buffered table
    tb = ((budget_bytes - table_bytes) // max(bytes_per_row, 1)) // pack * pack
    tb = max(pack, tb)
    cap = 2048                                         # diminishing returns past this
    if B >= 2 * pack:
        cap = min(cap, _round_up(pl.cdiv(B, 2), pack))  # >= 2 grid steps
    tb = min(tb, cap)
    if tb >= B:
        tb = B                                         # single full-extent block
    return tb


def source_embedding_forward(vectors, embedding_table):
    """vectors: list of n_sources arrays, each (batch, emb_size).
    embedding_table: (n_sources, emb_size).
    Returns list of n_sources arrays, each (batch, emb_size)."""
    n_sources, emb_size = embedding_table.shape
    assert len(vectors) == n_sources, (
        "Unexpected amount of source vectors for Embedding Layer")
    B, E = vectors[0].shape
    assert E == emb_size
    for v in vectors:
        assert v.shape == (B, E)

    dtype = vectors[0].dtype
    itemsize = jnp.dtype(dtype).itemsize
    io_bytes = 2 * n_sources * B * E * itemsize

    # Small-problem bypass: let XLA fuse the broadcast add for free.
    if io_bytes < _SMALL_PROBLEM_BYTES:
        return [v + embedding_table[i][None, :].astype(dtype)
                for i, v in enumerate(vectors)]

    emb = embedding_table.astype(dtype)

    budget = _vmem_budget_bytes()
    tb = _pick_batch_tile(B, E, n_sources, itemsize, budget)
    num_tiles = pl.cdiv(B, tb)                         # ragged last block is fine

    footprint = 4 * n_sources * tb * E * itemsize + 2 * n_sources * E * itemsize
    vmem_limit = max(16 << 20, footprint + (4 << 20))  # explicit, with margin

    vec_spec = pl.BlockSpec((tb, E), lambda j: (j, 0))
    emb_spec = pl.BlockSpec((n_sources, E), lambda j: (0, 0))

    cost = pl.CostEstimate(
        flops=n_sources * B * E,
        transcendentals=0,
        bytes_accessed=io_bytes + n_sources * E * itemsize)

    out = pl.pallas_call(
        _make_kernel(n_sources),
        out_shape=tuple(jax.ShapeDtypeStruct((B, E), dtype)
                        for _ in range(n_sources)),
        grid_spec=pltpu.PrefetchScalarGridSpec(
            num_scalar_prefetch=0,
            grid=(num_tiles,),
            in_specs=[emb_spec] + [vec_spec] * n_sources,
            out_specs=[vec_spec] * n_sources,
        ),
        compiler_params=pltpu.CompilerParams(
            dimension_semantics=("parallel",),
            vmem_limit_bytes=vmem_limit),
        cost_estimate=cost,
    )(emb, *vectors)

    return list(out)


if __name__ == "__main__":
    root = jax.random.PRNGKey(0)
    k_small, k_big = jax.random.split(root)

    # --- Case 1: small, module-typical shapes (n=4, B=8, E=128) -> bypass path.
    n_sources, batch, emb_size = 4, 8, 128
    k_emb, *k_vecs = jax.random.split(k_small, 1 + n_sources)
    table_s = jax.random.normal(k_emb, (n_sources, emb_size), dtype=jnp.float32)
    vecs_s = [jax.random.normal(k, (batch, emb_size), dtype=jnp.float32)
              for k in k_vecs]
    out_s = [jax.block_until_ready(r)
             for r in source_embedding_forward(vecs_s, table_s)]
    for i, (r, v) in enumerate(zip(out_s, vecs_s)):
        assert jnp.allclose(r, v + table_s[i][None, :], atol=1e-6), \
            f"mismatch (small) at source {i}"

    # --- Case 2: larger ragged batch -> exercises the Pallas kernel path
    #     (>= 2 grid steps, ragged last block, explicit vmem limit).
    n_sources2, batch2, emb_size2 = 3, 1000, 256
    k_emb2, *k_vecs2 = jax.random.split(k_big, 1 + n_sources2)
    table_b = jax.random.normal(k_emb2, (n_sources2, emb_size2), dtype=jnp.float32)
    vecs_b = [jax.random.normal(k, (batch2, emb_size2), dtype=jnp.float32)
              for k in k_vecs2]
    out_b = [jax.block_until_ready(r)
             for r in source_embedding_forward(vecs_b, table_b)]
    for i, (r, v) in enumerate(zip(out_b, vecs_b)):
        assert jnp.allclose(r, v + table_b[i][None, :], atol=1e-6), \
            f"mismatch (kernel) at source {i}"

    print("KERNEL_OK")
</pallas_src>

<mosaic_0001>
module attributes {stable_mosaic.version = 11 : i64} {
  func.func @kernel(%arg0: i32, %arg1: memref<3x256xf32, #tpu.memory_space<vmem>>, %arg2: memref<504x256xf32, #tpu.memory_space<vmem>>, %arg3: memref<504x256xf32, #tpu.memory_space<vmem>>, %arg4: memref<504x256xf32, #tpu.memory_space<vmem>>, %arg5: memref<504x256xf32, #tpu.memory_space<vmem>>, %arg6: memref<504x256xf32, #tpu.memory_space<vmem>>, %arg7: memref<504x256xf32, #tpu.memory_space<vmem>>) attributes {dimension_semantics = [#tpu.dimension_semantics<parallel>], iteration_bounds = array<i64: 2>, scalar_prefetch = 0 : i64, scratch_operands = 0 : i64, tpu.core_type = #tpu.core_type<tc>, window_params = [{pipeline_mode = #tpu.pipeline_mode<synchronous>, transform_indices = @transform_0, window_bounds = array<i64: 3, 256>}, {transform_indices = @transform_1, window_bounds = array<i64: 504, 256>}, {transform_indices = @transform_2, window_bounds = array<i64: 504, 256>}, {transform_indices = @transform_3, window_bounds = array<i64: 504, 256>}, {transform_indices = @transform_4, window_bounds = array<i64: 504, 256>}, {transform_indices = @transform_5, window_bounds = array<i64: 504, 256>}, {transform_indices = @transform_6, window_bounds = array<i64: 504, 256>}]} {
    %c0 = arith.constant 0 : index
    %c0_0 = arith.constant 0 : index
    %0 = vector.load %arg1[%c0, %c0_0] : memref<3x256xf32, #tpu.memory_space<vmem>>, vector<3x256xf32>
    %c0_1 = arith.constant 0 : index
    %c0_2 = arith.constant 0 : index
    %1 = vector.load %arg2[%c0_1, %c0_2] : memref<504x256xf32, #tpu.memory_space<vmem>>, vector<504x256xf32>
    %2 = vector.extract_strided_slice %0 {offsets = [0, 0], sizes = [1, 256], strides = [1, 1]} : vector<3x256xf32> to vector<1x256xf32>
    %3 = vector.shape_cast %2 : vector<1x256xf32> to vector<256xf32>
    %4 = vector.shape_cast %3 : vector<256xf32> to vector<1x256xf32>
    %5 = vector.broadcast %4 : vector<1x256xf32> to vector<504x256xf32>
    %6 = arith.addf %1, %5 : vector<504x256xf32>
    %c0_3 = arith.constant 0 : index
    %c0_4 = arith.constant 0 : index
    %7 = vector.load %arg5[%c0_3, %c0_4] : memref<504x256xf32, #tpu.memory_space<vmem>>, vector<504x256xf32>
    tpu.vector_store %arg5[%c0_3, %c0_4], %6 {strides = array<i32>} : memref<504x256xf32, #tpu.memory_space<vmem>>, vector<504x256xf32>,
    %c0_5 = arith.constant 0 : index
    %c0_6 = arith.constant 0 : index
    %8 = vector.load %arg3[%c0_5, %c0_6] : memref<504x256xf32, #tpu.memory_space<vmem>>, vector<504x256xf32>
    %9 = vector.extract_strided_slice %0 {offsets = [1, 0], sizes = [1, 256], strides = [1, 1]} : vector<3x256xf32> to vector<1x256xf32>
    %10 = vector.shape_cast %9 : vector<1x256xf32> to vector<256xf32>
    %11 = vector.shape_cast %10 : vector<256xf32> to vector<1x256xf32>
    %12 = vector.broadcast %11 : vector<1x256xf32> to vector<504x256xf32>
    %13 = arith.addf %8, %12 : vector<504x256xf32>
    %c0_7 = arith.constant 0 : index
    %c0_8 = arith.constant 0 : index
    %14 = vector.load %arg6[%c0_7, %c0_8] : memref<504x256xf32, #tpu.memory_space<vmem>>, vector<504x256xf32>
    tpu.vector_store %arg6[%c0_7, %c0_8], %13 {strides = array<i32>} : memref<504x256xf32, #tpu.memory_space<vmem>>, vector<504x256xf32>,
    %c0_9 = arith.constant 0 : index
    %c0_10 = arith.constant 0 : index
    %15 = vector.load %arg4[%c0_9, %c0_10] : memref<504x256xf32, #tpu.memory_space<vmem>>, vector<504x256xf32>
    %16 = vector.extract_strided_slice %0 {offsets = [2, 0], sizes = [1, 256], strides = [1, 1]} : vector<3x256xf32> to vector<1x256xf32>
    %17 = vector.shape_cast %16 : vector<1x256xf32> to vector<256xf32>
    %18 = vector.shape_cast %17 : vector<256xf32> to vector<1x256xf32>
    %19 = vector.broadcast %18 : vector<1x256xf32> to vector<504x256xf32>
    %20 = arith.addf %15, %19 : vector<504x256xf32>
    %c0_11 = arith.constant 0 : index
    %c0_12 = arith.constant 0 : index
    %21 = vector.load %arg7[%c0_11, %c0_12] : memref<504x256xf32, #tpu.memory_space<vmem>>, vector<504x256xf32>
    tpu.vector_store %arg7[%c0_11, %c0_12], %20 {strides = array<i32>} : memref<504x256xf32, #tpu.memory_space<vmem>>, vector<504x256xf32>,
    return
  }
  func.func @transform_0(%arg0: i32) -> (i32, i32) {
    %c0_i32 = arith.constant 0 : i32
    %c0_i32_0 = arith.constant 0 : i32
    %c0_i32_1 = arith.constant 0 : i32
    return %c0_i32, %c0_i32_0 : i32, i32
  }
  func.func @transform_1(%arg0: i32) -> (i32, i32) {
    %c0_i32 = arith.constant 0 : i32
    %c0_i32_0 = arith.constant 0 : i32
    return %arg0, %c0_i32 : i32, i32
  }
  func.func @transform_2(%arg0: i32) -> (i32, i32) {
    %c0_i32 = arith.constant 0 : i32
    %c0_i32_0 = arith.constant 0 : i32
    return %arg0, %c0_i32 : i32, i32
  }
  func.func @transform_3(%arg0: i32) -> (i32, i32) {
    %c0_i32 = arith.constant 0 : i32
    %c0_i32_0 = arith.constant 0 : i32
    return %arg0, %c0_i32 : i32, i32
  }
  func.func @transform_4(%arg0: i32) -> (i32, i32) {
    %c0_i32 = arith.constant 0 : i32
    %c0_i32_0 = arith.constant 0 : i32
    return %arg0, %c0_i32 : i32, i32
  }
  func.func @transform_5(%arg0: i32) -> (i32, i32) {
    %c0_i32 = arith.constant 0 : i32
    %c0_i32_0 = arith.constant 0 : i32
    return %arg0, %c0_i32 : i32, i32
  }
  func.func @transform_6(%arg0: i32) -> (i32, i32) {
    %c0_i32 = arith.constant 0 : i32
    %c0_i32_0 = arith.constant 0 : i32
    return %arg0, %c0_i32 : i32, i32
  }
}

</mosaic_0001>

<bundles_post_ra>
// kernel: tpu_custom_call.1
= control target key start
LH: loop header
LB: loop body
LE: loop exit
PB: predicated region body
PF: predicated region fallthrough
CT: control target
= control target key end

     0   :  { %s3901_s0 = inlined_call_operand.hbm [shape: f32[3,256], index: 0, kind: input, shape index: {}]   ;;  %s3902_s1 = inlined_call_operand.hbm [shape: f32[1000,256], index: 1, kind: input, shape index: {}]   ;;  %s3903_s2 = inlined_call_operand.hbm [shape: f32[1000,256], index: 2, kind: input, shape index: {}]   ;;  %s3904_s3 = inlined_call_operand.hbm [shape: f32[1000,256], index: 3, kind: input, shape index: {}]   ;;  %s3905_s4 = inlined_call_operand.hbm [shape: f32[1000,256], index: 4, kind: output, shape index: {0}]   ;;  %s3906_s5 = inlined_call_operand.hbm [shape: f32[1000,256], index: 5, kind: output, shape index: {1}]   ;;  %s3907_s6 = inlined_call_operand.hbm [shape: f32[1000,256], index: 6, kind: output, shape index: {2}]  }
   0x1   :  { %3912 = sst [smem:[#allocation19_spill]] %s3901_s0 }
   0x2   :  { %3913 = sst [smem:[#allocation20_spill]] %s3902_s1 }
   0x3   :  { %12 = vsyncpa [#allocation3], 0 }
   0x4   :  { %13 = vsyncpa [#allocation6], 0 }
   0x5   :  { %15 = vsyncpa [#allocation6 + $0x1], 0 }
   0x6   :  { %16 = vsyncpa [#allocation9], 0 }
   0x7   :  { %18 = vsyncpa [#allocation9 + $0x1], 0 }
   0x8   :  { %19 = vsyncpa [#allocation4], 0 }
   0x9   :  { %21 = vsyncpa [#allocation4 + $0x1], 0 }
   0xa   :  { %22 = vsyncpa [#allocation12], 0 }
   0xb   :  { %24 = vsyncpa [#allocation12 + $0x1], 0  ;;  %s2335_s21 = smov 0   ;;  %s2337_s22 = smov 0  }
   0xc   :  { %s2339_s23 = smov 0   ;;  %s2341_s24 = smov 0  }
   0xd LB: > { %s2356_s25 = sadd.s32 4294967295, %s2279_s24   ;;  %s3909_s26 = sadd.s32 4294967294, %s2279_s24   ;;  %s2279_s24 = sphi %s2341_s24, %s3933_s24   ;;  %s2275_s23 = sphi %s2339_s23, %s3932_s23   ;;  %s2271_s22 = sphi %s2337_s22, %s3931_s22   ;;  %s2267_s21 = sphi %s2335_s21, %s3930_s21  }
   0xe   : > { %s2360_s27 = sadd.s32 1, %s2279_s24   ;;  %s58_s28 = sadd.s32 1, %s2275_s23 }
   0xf   : > { %s55_s29 = ssub.s32 %s2279_s24, %s2360_s27  ;;  %p65_p0 = scmp.ne.s32.totalorder %s2275_s23, %s2271_s22 }
  0x10   : > { %p56_p1 = scmp.eq.s32.totalorder %s55_s29, 0  ;;  %p66_p2 = scmp.eq.s32.totalorder %s2279_s24, 0 }
  0x11   : > { %p71_p3 = scmp.ne.s32.totalorder %s2271_s22, %s2267_s21  ;;  %p3911_p4 = scmp.eq.s32.totalorder %s2356_s25, 0 }
  0x12   : > { %s2372_s30 = scalar_select %p56_p1, %s2275_s23, %s58_s28  }
  0x13   : > { %p2374_p5 = por %p66_p2, %p65_p0  ;;  %p2380_p6 = por %p3911_p4, %p71_p3 }
  0x14   : > { %p147_p7 = scmp.eq.s32.totalorder %s2356_s25, 1  ;;  %p153_p8 = scmp.eq.s32.totalorder %s3909_s26, 1 }
  0x15   : > { %s3915_s8 = scalar_select %p2380_p6, 1, 0 }
  0x16   : > { %p1898_p9 = scmp.ge.s32.totalorder %s2279_s24, 1  ;;  %p212_p10 = scmp.lt.s32.totalorder %s2279_s24, 3 }
  0x17   : > { %p2389_p11 = por %p147_p7, %p65_p0  ;;  %p2393_p12 = por %p153_p8, %p71_p3 }
  0x18   : > { %p2397_p13 = pnand %p1898_p9, %p212_p10  ;;  %s2281_s12 = smov [#allocation2]  }
  0x19   : > { %s3916_s9 = scalar_select %p2389_p11, 1, 0 }
  0x1a   : > { %s3917_s10 = scalar_select %p2393_p12, 1, 0 }
  0x1b   : > { %p1985_p1 = pneg %p2397_p13  ;;  %s225_s13 = sshll.u32 %s2281_s12, 4  ;;  %s226_s13 = int_to_ptr.vmem [resolvable:$true] %s225_s13 }
  0x1c   : > { %s2058_s14 = scalar_lea.vmem %s226_s13, 128  ;;  %p2066_p8 = scmp.lt.s32.totalorder %s226_s13, %s226_s13 }
  0x1d   : > { %p1986_p2 = pnand %p1985_p1, %p3911_p4  ;;  %p2059_p7 = scmp.ne.s32.totalorder %s226_s13, %s2058_s14 }
  0x1e   : > { %p2067_p6 = scmp.lt.s32.totalorder %s2058_s14, %s2058_s14 }
  0x1f   : > { %p2049_p0 = pneg %p1986_p2 }
  0x20   : > { %p2068_p12 = por %p2067_p6, %p2066_p8 }
  0x21   : > { %p2061_p11 = pnand %p2059_p7, %p2049_p0 }
  0x23   : > { %p2062_p3 = pneg %p2061_p11 }
  0x25   : > { %p2069_p9 = pnand %p2068_p12, %p2062_p3 }
  0x27   : > { %2072 = shalt.err (!%p2069_p9)
}
  0x28   : > { %s3919_s0 = sld [smem:[#allocation19_spill]]  ;;  %p3910_p10 = scmp.ge.s32.totalorder %s2279_s24, 2 }
  0x2a   : > { %232 = sbr.rel (%p3910_p10) target bundleno = 154 (0x9a), region = 20 }
  0x2e   : > { %1988 = dma.hbm_to_vmem [thread:$0]  (!%p1986_p2), %s3919_s0, 128, %s226_s13, [#allocation3]  }
  0x2f   : > { %235 = sbr.rel (!%p2374_p5) target bundleno = 86 (0x56), region = 24  ;;  %s236_s17 = sand.u32 (%p2374_p5), 1, %s2279_s24  }
  0x30   : > { %s238_s18 = sand.u32 (%p2374_p5), 1, %s2275_s23   ;;  %s241_s20 = smul.u32 (%p2374_p5), 63, %s2279_s24 }
  0x31   : > { %s1971_s19 = smul.u32 (%p2374_p5), 1008, %s238_s18  ;;  %s2419_s13 = scalar_lea.sflag (%p2374_p5), [#allocation6], %s236_s17 }
  0x32   : > { %s242_s28 = ssub.s32 (%p2374_p5), 125, %s241_s20 }
  0x33   : > { %p243_p6 = scmp.lt.s32.totalorder (%p2374_p5), %s242_s28, 63  ;;  %s240_s14 = scalar_lea.vmem (%p2374_p5), [#allocation5], %s1971_s19 }
  0x35   : > { %s3935_s28 = smov (!%p243_p6, %s242_s28), 63 }
  0x36   : > { %s2416_s29 = sshll.u32 %s3935_s28, 8 }
  0x37   : > { %s248_s12 = ssub.s32 16128, %s2416_s29 }
  0x38   : > { %249 = vsyncadd %s2419_s13, %s248_s12  ;;  %p1903_p11 = scmp.ne.s32.totalorder %s2416_s29, 0  ;;  %s1965_s15 = smul.u32 16128, %s2279_s24 }
  0x39   : > { %s255_s16 = sshll.u32 %s240_s14, 4  ;;  %s3920_s1 = sld [smem:[#allocation20_spill]]  ;;  %s2429_s16 = int_to_ptr.vmem [resolvable:$true] %s255_s16 }
  0x3f   : > { %s2427_s26 = scalar_lea.hbm %s3920_s1, %s1965_s15  ;;  %s2077_s12 = scalar_lea.hbm %s3920_s1, 32000 }
  0x40   : > { %s2073_s17 = scalar_lea.hbm %s2427_s26, %s2416_s29  ;;  %p2078_p0 = scmp.lt.s32.totalorder %s2427_s26, %s3920_s1 }
  0x41   : > { %p2074_p12 = scmp.ne.s32.totalorder %s2427_s26, %s2073_s17  ;;  %p2079_p7 = scmp.lt.s32.totalorder %s2077_s12, %s2073_s17 }
  0x43   : > { %p2075_p1 = pnand %p2074_p12, %p1903_p11  ;;  %p2080_p3 = por %p2079_p7, %p2078_p0 }
  0x45   : > { %p2076_p2 = pneg %p2075_p1 }
  0x47   : > { %p2081_p8 = pnand %p2080_p3, %p2076_p2 }
  0x49   : > { %2084 = shalt.err (!%p2081_p8)
}
  0x4a   : > { %s2085_s15 = scalar_lea.vmem %s2429_s16, %s2416_s29  ;;  %s2282_s18 = smov [#allocation5]  }
  0x4b   : > { %p2086_p9 = scmp.ne.s32.totalorder %s2429_s16, %s2085_s15  ;;  %s2089_s20 = sshll.u32 %s2282_s18, 4  ;;  %s2090_s20 = int_to_ptr.vmem [resolvable:$false] %s2089_s20 }
  0x4c   : > { %s2091_s19 = scalar_lea.vmem %s2090_s20, 32256  ;;  %p2092_p1 = scmp.lt.s32.totalorder %s2429_s16, %s2090_s20 }
  0x4d   : > { %p2087_p6 = pnand %p2086_p9, %p1903_p11  ;;  %p2093_p10 = scmp.lt.s32.totalorder %s2091_s19, %s2085_s15 }
  0x4f   : > { %p2088_p12 = pneg %p2087_p6  ;;  %p2094_p4 = por %p2093_p10, %p2092_p1 }
  0x51   : > { %p2095_p0 = pnand %p2094_p4, %p2088_p12 }
  0x53   : > { %2098 = shalt.err (!%p2095_p0)
}
  0x54   : > { %s2283_s0 = smov 256   ;;  %s2284_s17 = smov 16  }
  0x55   : > { %261 = dma.hbm_to_vmem [thread:$0]  (%p1903_p11), %s2427_s26, %s2416_s29, %s2429_s16, %s2419_s13, %s2283_s0, %s2283_s0, %s2284_s17  }
  0x56 PF: > { %264 = sbr.rel (!%p2374_p5) target bundleno = 120 (0x78), region = 28  ;;  %s265_s28 = sand.u32 (%p2374_p5), 1, %s2279_s24  }
  0x57   : > { %s267_s12 = sand.u32 (%p2374_p5), 1, %s2275_s23   ;;  %s270_s15 = smul.u32 (%p2374_p5), 63, %s2279_s24 }
  0x58   : > { %s1972_s14 = smul.u32 (%p2374_p5), 1008, %s267_s12  ;;  %s2463_s1 = scalar_lea.sflag (%p2374_p5), [#allocation6], %s265_s28 }
  0x59   : > { %s271_s18 = ssub.s32 (%p2374_p5), 125, %s270_s15 }
  0x5a   : > { %p272_p4 = scmp.lt.s32.totalorder (%p2374_p5), %s271_s18, 63  ;;  %s269_s26 = scalar_lea.vmem (%p2374_p5), [#allocation7], %s1972_s14 }
  0x5c   : > { %s3937_s18 = smov (!%p272_p4, %s271_s18), 63 }
  0x5d   : > { %s2460_s20 = sshll.u32 %s3937_s18, 8 }
  0x5e   : > { %s277_s19 = ssub.s32 16128, %s2460_s20 }
  0x5f   : > { %278 = vsyncadd %s2463_s1, %s277_s19  ;;  %p1910_p10 = scmp.ne.s32.totalorder %s2460_s20, 0  ;;  %s1966_s29 = smul.u32 16128, %s2279_s24 }
  0x60   : > { %s284_s13 = sshll.u32 %s269_s26, 4  ;;  %s2103_s15 = scalar_lea.hbm %s3903_s2, 32000  ;;  %s2473_s13 = int_to_ptr.vmem [resolvable:$true] %s284_s13 }
  0x61   : > { %s2471_s17 = scalar_lea.hbm %s3903_s2, %s1966_s29 }
  0x62   : > { %s2099_s28 = scalar_lea.hbm %s2471_s17, %s2460_s20  ;;  %p2104_p3 = scmp.lt.s32.totalorder %s2471_s17, %s3903_s2 }
  0x63   : > { %p2100_p11 = scmp.ne.s32.totalorder %s2471_s17, %s2099_s28  ;;  %p2105_p8 = scmp.lt.s32.totalorder %s2103_s15, %s2099_s28 }
  0x65   : > { %p2101_p2 = pnand %p2100_p11, %p1910_p10  ;;  %p2106_p9 = por %p2105_p8, %p2104_p3 }
  0x67   : > { %p2102_p7 = pneg %p2101_p2 }
  0x69   : > { %p2107_p6 = pnand %p2106_p9, %p2102_p7 }
  0x6b   : > { %2110 = shalt.err (!%p2107_p6)
}
  0x6c   : > { %s2111_s26 = scalar_lea.vmem %s2473_s13, %s2460_s20  ;;  %s2285_s29 = smov [#allocation7]  }
  0x6d   : > { %p2112_p12 = scmp.ne.s32.totalorder %s2473_s13, %s2111_s26  ;;  %s2115_s16 = sshll.u32 %s2285_s29, 4  ;;  %s2116_s16 = int_to_ptr.vmem [resolvable:$false] %s2115_s16 }
  0x6e   : > { %s2117_s0 = scalar_lea.vmem %s2116_s16, 32256  ;;  %p2118_p4 = scmp.lt.s32.totalorder %s2473_s13, %s2116_s16 }
  0x6f   : > { %p2113_p1 = pnand %p2112_p12, %p1910_p10  ;;  %p2119_p11 = scmp.lt.s32.totalorder %s2117_s0, %s2111_s26 }
  0x71   : > { %p2114_p0 = pneg %p2113_p1  ;;  %p2120_p2 = por %p2119_p11, %p2118_p4 }
  0x73   : > { %p2121_p3 = pnand %p2120_p2, %p2114_p0 }
  0x75   : > { %2124 = shalt.err (!%p2121_p3)
}
  0x76   : > { %s2286_s28 = smov 256   ;;  %s2287_s12 = smov 16  }
  0x77   : > { %290 = dma.hbm_to_vmem [thread:$0]  (%p1910_p10), %s2471_s17, %s2460_s20, %s2473_s13, %s2463_s1, %s2286_s28, %s2286_s28, %s2287_s12  }
  0x78 PF: > { %293 = sbr.rel (!%p2374_p5) target bundleno = 154 (0x9a), region = 32  ;;  %s294_s14 = sand.u32 (%p2374_p5), 1, %s2275_s23  }
  0x79   : > { %s299_s15 = smul.u32 (%p2374_p5), 63, %s2279_s24  ;;  %s2506_s16 = scalar_lea.sflag (%p2374_p5), [#allocation9], %s294_s14 }
  0x7a   : > { %s1973_s18 = smul.u32 (%p2374_p5), 1008, %s294_s14 }
  0x7b   : > { %s300_s19 = ssub.s32 (%p2374_p5), 125, %s299_s15 }
  0x7c   : > { %p301_p7 = scmp.lt.s32.totalorder (%p2374_p5), %s300_s19, 63  ;;  %s298_s1 = scalar_lea.vmem (%p2374_p5), [#allocation8], %s1973_s18 }
  0x7e   : > { %s3939_s19 = smov (!%p301_p7, %s300_s19), 63 }
  0x7f   : > { %s2503_s26 = sshll.u32 %s3939_s19, 8 }
  0x80   : > { %s306_s29 = ssub.s32 16128, %s2503_s26 }
  0x81   : > { %307 = vsyncadd %s2506_s16, %s306_s29  ;;  %p1917_p5 = scmp.ne.s32.totalorder %s2503_s26, 0  ;;  %s1967_s7 = smul.u32 16128, %s2279_s24 }
  0x82   : > { %s313_s20 = sshll.u32 %s298_s1, 4  ;;  %s2129_s15 = scalar_lea.hbm %s3904_s3, 32000  ;;  %s2516_s20 = int_to_ptr.vmem [resolvable:$true] %s313_s20 }
  0x83   : > { %s2514_s0 = scalar_lea.hbm %s3904_s3, %s1967_s7 }
  0x84   : > { %s2125_s28 = scalar_lea.hbm %s2514_s0, %s2503_s26  ;;  %p2130_p6 = scmp.lt.s32.totalorder %s2514_s0, %s3904_s3 }
  0x85   : > { %p2126_p10 = scmp.ne.s32.totalorder %s2514_s0, %s2125_s28  ;;  %p2131_p12 = scmp.lt.s32.totalorder %s2129_s15, %s2125_s28 }
  0x87   : > { %p2127_p8 = pnand %p2126_p10, %p1917_p5  ;;  %p2132_p1 = por %p2131_p12, %p2130_p6 }
  0x89   : > { %p2128_p9 = pneg %p2127_p8 }
  0x8b   : > { %p2133_p0 = pnand %p2132_p1, %p2128_p9 }
  0x8d   : > { %2136 = shalt.err (!%p2133_p0)
}
  0x8e   : > { %s2137_s29 = scalar_lea.vmem %s2516_s20, %s2503_s26  ;;  %s2288_s1 = smov [#allocation8]  }
  0x8f   : > { %p2138_p4 = scmp.ne.s32.totalorder %s2516_s20, %s2137_s29  ;;  %s2141_s7 = sshll.u32 %s2288_s1, 4  ;;  %s2142_s7 = int_to_ptr.vmem [resolvable:$false] %s2141_s7 }
  0x90   : > { %s2143_s13 = scalar_lea.vmem %s2142_s7, 32256  ;;  %p2144_p3 = scmp.lt.s32.totalorder %s2516_s20, %s2142_s7 }
  0x91   : > { %p2139_p11 = pnand %p2138_p4, %p1917_p5  ;;  %p2145_p7 = scmp.lt.s32.totalorder %s2143_s13, %s2137_s29 }
  0x93   : > { %p2140_p2 = pneg %p2139_p11  ;;  %p2146_p10 = por %p2145_p7, %p2144_p3 }
  0x95   : > { %p2147_p8 = pnand %p2146_p10, %p2140_p2 }
  0x97   : > { %2150 = shalt.err (!%p2147_p8)
}
  0x98   : > { %s2289_s17 = smov 256   ;;  %s2290_s28 = smov 16  }
  0x99   : > { %319 = dma.hbm_to_vmem [thread:$0]  (%p1917_p5), %s2514_s0, %s2503_s26, %s2516_s20, %s2506_s16, %s2289_s17, %s2289_s17, %s2290_s28  }
  0x9a PF: > { %325 = sbr.rel (%p2397_p13) target bundleno = 464 (0x1d0), region = 36  ;;  %p3921_p9 = scmp.eq.s32.totalorder (!%p2397_p13), %s2356_s25, 0 }
  0x9f   : > { %2246 = dma.done.wait (%p3921_p9), [#allocation3], 128   ;;  %p3922_p6 = pmov %p3921_p9 }
  0xa0   : > { %s331_s12 = sand.u32 1, %s2356_s25   ;;  %s2550_s14 = sand.u32 1, %s2271_s22  }
  0xa1   : > { %2248 = vsyncadd (%p3922_p6), [#allocation3], 4294967168  ;;  %s2553_s26 = smul.u32 1008, %s2550_s14  ;;  %s332_s11 = scalar_lea.sflag [#allocation6], %s331_s12 }
  0xa2   : > { %p3923_p13 = scmp.ne.s32.totalorder %s3915_s8, 0 }
  0xa3   : > { %s2558_s16 = scalar_lea.vmem [#allocation5], %s2553_s26 }
  0xa4   : > { %2250 = dma.done.wait (%p3923_p13), %s332_s11, 32256  }
  0xa5   : > { %2252 = vsyncadd (%p3923_p13), %s332_s11, 4294935040  ;;  %s2565_s20 = scalar_lea.vmem [#allocation7], %s2553_s26  ;;  %s350_s0 = scalar_lea.sflag [#allocation9], %s2550_s14 }
  0xa6   : > { %s2569_s15 = scalar_lea.vmem [#allocation8], %s2553_s26 }
  0xa7   : > { %2254 = dma.done.wait (%p3923_p13), %s350_s0, 16128  }
  0xa8   : > { %2256 = vsyncadd (%p3923_p13), %s350_s0, 4294951168  ;;  %v566_v0 = vlaneseq  ;;  %v2581_v6 = vld [vmem:[#allocation2] sm:$0x77]  ;;  %v439_v7 = vld [vmem:[%s2558_s16] sm:$0xff]  ;;  %s2624_s8 = scalar_lea.vmem [#allocation10], %s2553_s26  ;;  %s3003_s18 = scalar_lea.vmem [#allocation11], %s2553_s26 }
  0xa9   : > { %v440_v8 = vld [vmem:[%s2558_s16 + $0x8] sm:$0xff]  ;;  %v441_v11 = vld [vmem:[%s2558_s16 + $0x10] sm:$0xff]  ;;  %v442_v12 = vld [vmem:[%s2558_s16 + $0x18] sm:$0xff]  ;;  %s3384_s19 = scalar_lea.vmem [#allocation13], %s2553_s26  ;;  %s1629_s29 = scalar_lea.sflag [#allocation4], %s2550_s14 }
  0xaa   : > { %v2575_v1 = vshrl.u32 %v566_v0, 7  ;;  %v443_v13 = vld [vmem:[%s2558_s16 + $0x20] sm:$0xff]  ;;  %v444_v14 = vld [vmem:[%s2558_s16 + $0x28] sm:$0xff]  ;;  %v445_v15 = vld [vmem:[%s2558_s16 + $0x30] sm:$0xff]  ;;  %s3754_s1 = scalar_lea.sflag [#allocation12], %s331_s12  ;;  %p3924_p5 = scmp.ne.s32.totalorder %s3916_s9, 0 }
  0xab   : > { %v446_v16 = vld [vmem:[%s2558_s16 + $0x38] sm:$0xff]  ;;  %v447_v21 = vld [vmem:[%s2558_s16 + $0x40] sm:$0xff]  ;;  %v448_v22 = vld [vmem:[%s2558_s16 + $0x48] sm:$0xff]  ;;  %s1646_s7 = smul.u32 (%p3924_p5), 63, %s2356_s25 }
  0xac   : > { %v568_v2 = vsub.s32 0, %v2575_v1  ;;  %v572_v3 = vsub.s32 4, %v2575_v1  ;;  %v1360_v4 = vsub.s32 2, %v2575_v1  ;;  %v1364_v5 = vsub.s32 6, %v2575_v1  ;;  %v449_v23 = vld [vmem:[%s2558_s16 + $0x50] sm:$0xff]  ;;  %v450_v24 = vld [vmem:[%s2558_s16 + $0x58] sm:$0xff] }
  0xad   : > { %v451_v25 = vld [vmem:[%s2558_s16 + $0x60] sm:$0xff]  ;;  %v452_v26 = vld [vmem:[%s2558_s16 + $0x68] sm:$0xff]  ;;  %v453_v33 = vld [vmem:[%s2558_s16 + $0x70] sm:$0xff]  ;;  %s1647_s13 = ssub.s32 (%p3924_p5), 125, %s1646_s7 }
  0xae   : > { %v569_v9 = vrot.slane %v2581_v6, %v568_v2  ;;  %v573_v10 = vrot.slane %v2581_v6, %v572_v3  ;;  %v1361_v17 = vrot.slane %v2581_v6, %v1360_v4  ;;  %v1365_v18 = vrot.slane %v2581_v6, %v1364_v5  ;;  %v454_v34 = vld [vmem:[%s2558_s16 + $0x78] sm:$0xff]  ;;  %v455_v35 = vld [vmem:[%s2558_s16 + $0x80] sm:$0xff]  ;;  %v456_v40 = vld [vmem:[%s2558_s16 + $0x88] sm:$0xff]  ;;  %p1648_p12 = scmp.lt.s32.totalorder (%p3924_p5), %s1647_s13, 63 }
  0xaf   : > { %v457_v41 = vld [vmem:[%s2558_s16 + $0x90] sm:$0xff]  ;;  %v458_v42 = vld [vmem:[%s2558_s16 + $0x98] sm:$0xff]  ;;  %v459_v47 = vld [vmem:[%s2558_s16 + $0xa0] sm:$0xff] }
  0xb0   : > { %v2595_v19 = vrot.slane %v569_v9, %v568_v2  ;;  %v2597_v20 = vrot.slane %v573_v10, %v568_v2  ;;  %v2605_v27 = vrot.slane %v1361_v17, %v1360_v4  ;;  %v2607_v28 = vrot.slane %v1365_v18, %v1360_v4  ;;  %v460_v48 = vld [vmem:[%s2558_s16 + $0xa8] sm:$0xff]  ;;  %v461_v49 = vld [vmem:[%s2558_s16 + $0xb0] sm:$0xff]  ;;  %v462_v54 = vld [vmem:[%s2558_s16 + $0xb8] sm:$0xff] }
  0xb1   : > { %v463_v55 = vld [vmem:[%s2558_s16 + $0xc0] sm:$0xff]  ;;  %v464_v56 = vld [vmem:[%s2558_s16 + $0xc8] sm:$0xff]  ;;  %v465_v61 = vld [vmem:[%s2558_s16 + $0xd0] sm:$0xff] }
  0xb2   : > { %v584_v29 = vadd.f32 %v2595_v19, %v439_v7  ;;  %v585_v30 = vadd.f32 %v2597_v20, %v440_v8  ;;  %v586_v31 = vadd.f32 %v2595_v19, %v441_v11  ;;  %v587_v32 = vadd.f32 %v2597_v20, %v442_v12  ;;  %v466_v62 = vld [vmem:[%s2558_s16 + $0xd8] sm:$0xff]  ;;  %v467_v63 = vld [vmem:[%s2558_s16 + $0xe0] sm:$0xff]  ;;  %v468_v5 = vld [vmem:[%s2558_s16 + $0xe8] sm:$0xff] }
  0xb3   : > { %v588_v36 = vadd.f32 %v2595_v19, %v443_v13  ;;  %v589_v37 = vadd.f32 %v2597_v20, %v444_v14  ;;  %v590_v38 = vadd.f32 %v2595_v19, %v445_v15  ;;  %v591_v39 = vadd.f32 %v2597_v20, %v446_v16  ;;  %v469_v7 = vld [vmem:[%s2558_s16 + $0xf0] sm:$0xff]  ;;  %v470_v8 = vld [vmem:[%s2558_s16 + $0xf8] sm:$0xff]  ;;  %v471_v13 = vld [vmem:[%s2558_s16 + $0x100] sm:$0xff] }
  0xb4   : > { %710 = vst [vmem:[%s2624_s8] sm:$0xff] %v584_v29  ;;  %711 = vst [vmem:[%s2624_s8 + $0x8] sm:$0xff] %v585_v30  ;;  %v592_v43 = vadd.f32 %v2595_v19, %v447_v21  ;;  %v593_v44 = vadd.f32 %v2597_v20, %v448_v22  ;;  %v594_v45 = vadd.f32 %v2595_v19, %v449_v23  ;;  %v472_v14 = vld [vmem:[%s2558_s16 + $0x108] sm:$0xff]  ;;  %v473_v15 = vld [vmem:[%s2558_s16 + $0x110] sm:$0xff] }
  0xb5   : > { %712 = vst [vmem:[%s2624_s8 + $0x10] sm:$0xff] %v586_v31  ;;  %713 = vst [vmem:[%s2624_s8 + $0x18] sm:$0xff] %v587_v32  ;;  %v595_v46 = vadd.f32 %v2597_v20, %v450_v24  ;;  %v596_v50 = vadd.f32 %v2595_v19, %v451_v25  ;;  %v597_v51 = vadd.f32 %v2597_v20, %v452_v26  ;;  %v474_v22 = vld [vmem:[%s2558_s16 + $0x118] sm:$0xff]  ;;  %v475_v23 = vld [vmem:[%s2558_s16 + $0x120] sm:$0xff] }
  0xb6   : > { %714 = vst [vmem:[%s2624_s8 + $0x20] sm:$0xff] %v588_v36  ;;  %715 = vst [vmem:[%s2624_s8 + $0x28] sm:$0xff] %v589_v37  ;;  %v598_v52 = vadd.f32 %v2595_v19, %v453_v33  ;;  %v599_v53 = vadd.f32 %v2597_v20, %v454_v34  ;;  %v600_v57 = vadd.f32 %v2595_v19, %v455_v35  ;;  %v476_v24 = vld [vmem:[%s2558_s16 + $0x128] sm:$0xff]  ;;  %v477_v31 = vld [vmem:[%s2558_s16 + $0x130] sm:$0xff] }
  0xb7   : > { %716 = vst [vmem:[%s2624_s8 + $0x30] sm:$0xff] %v590_v38  ;;  %717 = vst [vmem:[%s2624_s8 + $0x38] sm:$0xff] %v591_v39  ;;  %v601_v58 = vadd.f32 %v2597_v20, %v456_v40  ;;  %v602_v59 = vadd.f32 %v2595_v19, %v457_v41  ;;  %v603_v60 = vadd.f32 %v2597_v20, %v458_v42  ;;  %v478_v32 = vld [vmem:[%s2558_s16 + $0x138] sm:$0xff]  ;;  %v479_v33 = vld [vmem:[%s2558_s16 + $0x140] sm:$0xff] }
  0xb8   : > { %718 = vst [vmem:[%s2624_s8 + $0x40] sm:$0xff] %v592_v43  ;;  %719 = vst [vmem:[%s2624_s8 + $0x48] sm:$0xff] %v593_v44  ;;  %v604_v0 = vadd.f32 %v2595_v19, %v459_v47  ;;  %v605_v2 = vadd.f32 %v2597_v20, %v460_v48  ;;  %v606_v3 = vadd.f32 %v2595_v19, %v461_v49  ;;  %v480_v38 = vld [vmem:[%s2558_s16 + $0x148] sm:$0xff]  ;;  %v481_v39 = vld [vmem:[%s2558_s16 + $0x150] sm:$0xff] }
  0xb9   : > { %720 = vst [vmem:[%s2624_s8 + $0x50] sm:$0xff] %v594_v45  ;;  %721 = vst [vmem:[%s2624_s8 + $0x58] sm:$0xff] %v595_v46  ;;  %v607_v4 = vadd.f32 %v2597_v20, %v462_v54  ;;  %v608_v9 = vadd.f32 %v2595_v19, %v463_v55  ;;  %v609_v10 = vadd.f32 %v2597_v20, %v464_v56  ;;  %v482_v40 = vld [vmem:[%s2558_s16 + $0x158] sm:$0xff]  ;;  %v483_v45 = vld [vmem:[%s2558_s16 + $0x160] sm:$0xff] }
  0xba   : > { %722 = vst [vmem:[%s2624_s8 + $0x60] sm:$0xff] %v596_v50  ;;  %723 = vst [vmem:[%s2624_s8 + $0x68] sm:$0xff] %v597_v51  ;;  %v610_v11 = vadd.f32 %v2595_v19, %v465_v61  ;;  %v611_v12 = vadd.f32 %v2597_v20, %v466_v62  ;;  %v612_v16 = vadd.f32 %v2595_v19, %v467_v63  ;;  %v484_v46 = vld [vmem:[%s2558_s16 + $0x168] sm:$0xff]  ;;  %v485_v47 = vld [vmem:[%s2558_s16 + $0x170] sm:$0xff] }
  0xbb   : > { %724 = vst [vmem:[%s2624_s8 + $0x70] sm:$0xff] %v598_v52  ;;  %725 = vst [vmem:[%s2624_s8 + $0x78] sm:$0xff] %v599_v53  ;;  %v613_v17 = vadd.f32 %v2597_v20, %v468_v5  ;;  %v614_v18 = vadd.f32 %v2595_v19, %v469_v7  ;;  %v615_v21 = vadd.f32 %v2597_v20, %v470_v8  ;;  %v486_v51 = vld [vmem:[%s2558_s16 + $0x178] sm:$0xff]  ;;  %v487_v52 = vld [vmem:[%s2558_s16 + $0x180] sm:$0xff] }
  0xbc   : > { %726 = vst [vmem:[%s2624_s8 + $0x80] sm:$0xff] %v600_v57  ;;  %727 = vst [vmem:[%s2624_s8 + $0x88] sm:$0xff] %v601_v58  ;;  %v616_v25 = vadd.f32 %v2595_v19, %v471_v13  ;;  %v617_v26 = vadd.f32 %v2597_v20, %v472_v14  ;;  %v618_v29 = vadd.f32 %v2595_v19, %v473_v15  ;;  %v488_v53 = vld [vmem:[%s2558_s16 + $0x188] sm:$0xff]  ;;  %v489_v57 = vld [vmem:[%s2558_s16 + $0x190] sm:$0xff] }
  0xbd   : > { %728 = vst [vmem:[%s2624_s8 + $0x90] sm:$0xff] %v602_v59  ;;  %729 = vst [vmem:[%s2624_s8 + $0x98] sm:$0xff] %v603_v60  ;;  %v619_v30 = vadd.f32 %v2597_v20, %v474_v22  ;;  %v620_v34 = vadd.f32 %v2595_v19, %v475_v23  ;;  %v621_v35 = vadd.f32 %v2597_v20, %v476_v24  ;;  %v490_v58 = vld [vmem:[%s2558_s16 + $0x198] sm:$0xff]  ;;  %v491_v59 = vld [vmem:[%s2558_s16 + $0x1a0] sm:$0xff] }
  0xbe   : > { %730 = vst [vmem:[%s2624_s8 + $0xa0] sm:$0xff] %v604_v0  ;;  %731 = vst [vmem:[%s2624_s8 + $0xa8] sm:$0xff] %v605_v2  ;;  %v622_v36 = vadd.f32 %v2595_v19, %v477_v31  ;;  %v623_v37 = vadd.f32 %v2597_v20, %v478_v32  ;;  %v624_v41 = vadd.f32 %v2595_v19, %v479_v33  ;;  %v492_v63 = vld [vmem:[%s2558_s16 + $0x1a8] sm:$0xff]  ;;  %v493_v0 = vld [vmem:[%s2558_s16 + $0x1b0] sm:$0xff] }
  0xbf   : > { %732 = vst [vmem:[%s2624_s8 + $0xb0] sm:$0xff] %v606_v3  ;;  %733 = vst [vmem:[%s2624_s8 + $0xb8] sm:$0xff] %v607_v4  ;;  %v625_v42 = vadd.f32 %v2597_v20, %v480_v38  ;;  %v626_v43 = vadd.f32 %v2595_v19, %v481_v39  ;;  %v627_v44 = vadd.f32 %v2597_v20, %v482_v40  ;;  %v494_v2 = vld [vmem:[%s2558_s16 + $0x1b8] sm:$0xff]  ;;  %v495_v7 = vld [vmem:[%s2558_s16 + $0x1c0] sm:$0xff] }
  0xc0   : > { %734 = vst [vmem:[%s2624_s8 + $0xc0] sm:$0xff] %v608_v9  ;;  %735 = vst [vmem:[%s2624_s8 + $0xc8] sm:$0xff] %v609_v10  ;;  %v628_v48 = vadd.f32 %v2595_v19, %v483_v45  ;;  %v629_v49 = vadd.f32 %v2597_v20, %v484_v46  ;;  %v630_v50 = vadd.f32 %v2595_v19, %v485_v47  ;;  %v496_v8 = vld [vmem:[%s2558_s16 + $0x1c8] sm:$0xff]  ;;  %v497_v9 = vld [vmem:[%s2558_s16 + $0x1d0] sm:$0xff] }
  0xc1   : > { %736 = vst [vmem:[%s2624_s8 + $0xd0] sm:$0xff] %v610_v11  ;;  %737 = vst [vmem:[%s2624_s8 + $0xd8] sm:$0xff] %v611_v12  ;;  %v631_v54 = vadd.f32 %v2597_v20, %v486_v51  ;;  %v632_v55 = vadd.f32 %v2595_v19, %v487_v52  ;;  %v633_v56 = vadd.f32 %v2597_v20, %v488_v53  ;;  %v498_v13 = vld [vmem:[%s2558_s16 + $0x1d8] sm:$0xff]  ;;  %v499_v14 = vld [vmem:[%s2558_s16 + $0x1e0] sm:$0xff] }
  0xc2   : > { %738 = vst [vmem:[%s2624_s8 + $0xe0] sm:$0xff] %v612_v16  ;;  %739 = vst [vmem:[%s2624_s8 + $0xe8] sm:$0xff] %v613_v17  ;;  %v634_v60 = vadd.f32 %v2595_v19, %v489_v57  ;;  %v635_v61 = vadd.f32 %v2597_v20, %v490_v58  ;;  %v636_v62 = vadd.f32 %v2595_v19, %v491_v59  ;;  %v500_v15 = vld [vmem:[%s2558_s16 + $0x1e8] sm:$0xff]  ;;  %v502_v22 = vld [vmem:[%s2558_s16 + $0x1f8] sm:$0xff] }
  0xc3   : > { %740 = vst [vmem:[%s2624_s8 + $0xf0] sm:$0xff] %v614_v18  ;;  %741 = vst [vmem:[%s2624_s8 + $0xf8] sm:$0xff] %v615_v21  ;;  %v637_v3 = vadd.f32 %v2597_v20, %v492_v63  ;;  %v638_v4 = vadd.f32 %v2595_v19, %v493_v0  ;;  %v639_v5 = vadd.f32 %v2597_v20, %v494_v2  ;;  %v501_v21 = vld [vmem:[%s2558_s16 + $0x1f0] sm:$0xff]  ;;  %v503_v23 = vld [vmem:[%s2558_s16 + $0x200] sm:$0xff] }
  0xc4   : > { %742 = vst [vmem:[%s2624_s8 + $0x100] sm:$0xff] %v616_v25  ;;  %743 = vst [vmem:[%s2624_s8 + $0x108] sm:$0xff] %v617_v26  ;;  %v640_v10 = vadd.f32 %v2595_v19, %v495_v7  ;;  %v641_v11 = vadd.f32 %v2597_v20, %v496_v8  ;;  %v642_v12 = vadd.f32 %v2595_v19, %v497_v9  ;;  %v506_v31 = vld [vmem:[%s2558_s16 + $0x218] sm:$0xff]  ;;  %v513_v47 = vld [vmem:[%s2558_s16 + $0x250] sm:$0xff] }
  0xc5   : > { %744 = vst [vmem:[%s2624_s8 + $0x110] sm:$0xff] %v618_v29  ;;  %745 = vst [vmem:[%s2624_s8 + $0x118] sm:$0xff] %v619_v30  ;;  %v643_v16 = vadd.f32 %v2597_v20, %v498_v13  ;;  %v644_v17 = vadd.f32 %v2595_v19, %v499_v14  ;;  %v645_v18 = vadd.f32 %v2597_v20, %v500_v15  ;;  %v504_v29 = vld [vmem:[%s2558_s16 + $0x208] sm:$0xff]  ;;  %v505_v30 = vld [vmem:[%s2558_s16 + $0x210] sm:$0xff] }
  0xc6   : > { %746 = vst [vmem:[%s2624_s8 + $0x120] sm:$0xff] %v620_v34  ;;  %747 = vst [vmem:[%s2624_s8 + $0x128] sm:$0xff] %v621_v35  ;;  %v646_v24 = vadd.f32 %v2595_v19, %v501_v21  ;;  %v647_v25 = vadd.f32 %v2597_v20, %v502_v22  ;;  %v648_v26 = vadd.f32 %v2595_v19, %v503_v23  ;;  %v507_v35 = vld [vmem:[%s2558_s16 + $0x220] sm:$0xff]  ;;  %v516_v53 = vld [vmem:[%s2558_s16 + $0x268] sm:$0xff] }
  0xc7   : > { %748 = vst [vmem:[%s2624_s8 + $0x130] sm:$0xff] %v622_v36  ;;  %749 = vst [vmem:[%s2624_s8 + $0x138] sm:$0xff] %v623_v37  ;;  %v649_v32 = vadd.f32 %v2597_v20, %v504_v29  ;;  %v650_v33 = vadd.f32 %v2595_v19, %v505_v30  ;;  %v651_v34 = vadd.f32 %v2597_v20, %v506_v31  ;;  %v508_v36 = vld [vmem:[%s2558_s16 + $0x228] sm:$0xff]  ;;  %v509_v37 = vld [vmem:[%s2558_s16 + $0x230] sm:$0xff]  ;;  %v968_v29 = vsub.s32 5, %v2575_v1 }
  0xc8   : > { %750 = vst [vmem:[%s2624_s8 + $0x140] sm:$0xff] %v624_v41  ;;  %751 = vst [vmem:[%s2624_s8 + $0x148] sm:$0xff] %v625_v42  ;;  %v652_v38 = vadd.f32 %v2595_v19, %v507_v35  ;;  %v653_v39 = vadd.f32 %v2597_v20, %v508_v36  ;;  %v654_v40 = vadd.f32 %v2595_v19, %v509_v37  ;;  %v510_v41 = vld [vmem:[%s2558_s16 + $0x238] sm:$0xff]  ;;  %v511_v42 = vld [vmem:[%s2558_s16 + $0x240] sm:$0xff] }
  0xc9   : > { %752 = vst [vmem:[%s2624_s8 + $0x150] sm:$0xff] %v626_v43  ;;  %753 = vst [vmem:[%s2624_s8 + $0x158] sm:$0xff] %v627_v44  ;;  %v512_v43 = vld [vmem:[%s2558_s16 + $0x248] sm:$0xff]  ;;  %v655_v44 = vadd.f32 %v2597_v20, %v510_v41  ;;  %v656_v45 = vadd.f32 %v2595_v19, %v511_v42  ;;  %v519_v59 = vld [vmem:[%s2558_s16 + $0x280] sm:$0xff] }
  0xca   : > { %754 = vst [vmem:[%s2624_s8 + $0x160] sm:$0xff] %v628_v48  ;;  %755 = vst [vmem:[%s2624_s8 + $0x168] sm:$0xff] %v629_v49  ;;  %v657_v46 = vadd.f32 %v2597_v20, %v512_v43  ;;  %v514_v48 = vld [vmem:[%s2558_s16 + $0x258] sm:$0xff]  ;;  %v515_v49 = vld [vmem:[%s2558_s16 + $0x260] sm:$0xff] }
  0xcb   : > { %756 = vst [vmem:[%s2624_s8 + $0x170] sm:$0xff] %v630_v50  ;;  %757 = vst [vmem:[%s2624_s8 + $0x178] sm:$0xff] %v631_v54  ;;  %v658_v50 = vadd.f32 %v2595_v19, %v513_v47  ;;  %v659_v51 = vadd.f32 %v2597_v20, %v514_v48  ;;  %v660_v52 = vadd.f32 %v2595_v19, %v515_v49  ;;  %v517_v54 = vld [vmem:[%s2558_s16 + $0x270] sm:$0xff]  ;;  %v522_v2 = vld [vmem:[%s2558_s16 + $0x298] sm:$0xff] }
  0xcc   : > { %758 = vst [vmem:[%s2624_s8 + $0x180] sm:$0xff] %v632_v55  ;;  %759 = vst [vmem:[%s2624_s8 + $0x188] sm:$0xff] %v633_v56  ;;  %v518_v55 = vld [vmem:[%s2558_s16 + $0x278] sm:$0xff]  ;;  %v661_v56 = vadd.f32 %v2597_v20, %v516_v53  ;;  %v662_v57 = vadd.f32 %v2595_v19, %v517_v54  ;;  %v525_v9 = vld [vmem:[%s2558_s16 + $0x2b0] sm:$0xff]  ;;  %v969_v54 = vrot.slane %v2581_v6, %v968_v29 }
  0xcd   : > { %760 = vst [vmem:[%s2624_s8 + $0x190] sm:$0xff] %v634_v60  ;;  %761 = vst [vmem:[%s2624_s8 + $0x198] sm:$0xff] %v635_v61  ;;  %v663_v58 = vadd.f32 %v2597_v20, %v518_v55  ;;  %v520_v60 = vld [vmem:[%s2558_s16 + $0x288] sm:$0xff]  ;;  %v521_v61 = vld [vmem:[%s2558_s16 + $0x290] sm:$0xff] }
  0xce   : > { %762 = vst [vmem:[%s2624_s8 + $0x1a0] sm:$0xff] %v636_v62  ;;  %763 = vst [vmem:[%s2624_s8 + $0x1a8] sm:$0xff] %v637_v3  ;;  %v664_v62 = vadd.f32 %v2595_v19, %v519_v59  ;;  %v665_v63 = vadd.f32 %v2597_v20, %v520_v60  ;;  %v666_v0 = vadd.f32 %v2595_v19, %v521_v61  ;;  %v523_v3 = vld [vmem:[%s2558_s16 + $0x2a0] sm:$0xff]  ;;  %v528_v15 = vld [vmem:[%s2558_s16 + $0x2c8] sm:$0xff] }
  0xcf   : > { %764 = vst [vmem:[%s2624_s8 + $0x1b0] sm:$0xff] %v638_v4  ;;  %765 = vst [vmem:[%s2624_s8 + $0x1b8] sm:$0xff] %v639_v5  ;;  %v524_v4 = vld [vmem:[%s2558_s16 + $0x2a8] sm:$0xff]  ;;  %v667_v5 = vadd.f32 %v2597_v20, %v522_v2  ;;  %v668_v7 = vadd.f32 %v2595_v19, %v523_v3  ;;  %v673_v21 = vadd.f32 %v2597_v20, %v528_v15  ;;  %v545_v53 = vld [vmem:[%s2558_s16 + $0x350] sm:$0xff] }
  0xd0   : > { %766 = vst [vmem:[%s2624_s8 + $0x1c0] sm:$0xff] %v640_v10  ;;  %767 = vst [vmem:[%s2624_s8 + $0x1c8] sm:$0xff] %v641_v11  ;;  %v669_v8 = vadd.f32 %v2597_v20, %v524_v4  ;;  %v526_v10 = vld [vmem:[%s2558_s16 + $0x2b8] sm:$0xff]  ;;  %v527_v11 = vld [vmem:[%s2558_s16 + $0x2c0] sm:$0xff] }
  0xd1   : > { %768 = vst [vmem:[%s2624_s8 + $0x1d0] sm:$0xff] %v642_v12  ;;  %769 = vst [vmem:[%s2624_s8 + $0x1d8] sm:$0xff] %v643_v16  ;;  %v670_v12 = vadd.f32 %v2595_v19, %v525_v9  ;;  %v671_v13 = vadd.f32 %v2597_v20, %v526_v10  ;;  %v672_v14 = vadd.f32 %v2595_v19, %v527_v11  ;;  %v529_v16 = vld [vmem:[%s2558_s16 + $0x2d0] sm:$0xff]  ;;  %v536_v35 = vld [vmem:[%s2558_s16 + $0x308] sm:$0xff] }
  0xd2   : > { %770 = vst [vmem:[%s2624_s8 + $0x1e0] sm:$0xff] %v644_v17  ;;  %771 = vst [vmem:[%s2624_s8 + $0x1e8] sm:$0xff] %v645_v18  ;;  %v530_v17 = vld [vmem:[%s2558_s16 + $0x2d8] sm:$0xff]  ;;  %v2863_v18 = vsub.s32 1, %v2575_v1  ;;  %v674_v22 = vadd.f32 %v2595_v19, %v529_v16  ;;  %v681_v37 = vadd.f32 %v2597_v20, %v536_v35  ;;  %v547_v59 = vld [vmem:[%s2558_s16 + $0x360] sm:$0xff] }
  0xd3   : > { %772 = vst [vmem:[%s2624_s8 + $0x1f0] sm:$0xff] %v646_v24  ;;  %773 = vst [vmem:[%s2624_s8 + $0x1f8] sm:$0xff] %v647_v25  ;;  %v675_v23 = vadd.f32 %v2597_v20, %v530_v17  ;;  %v531_v24 = vld [vmem:[%s2558_s16 + $0x2e0] sm:$0xff]  ;;  %v532_v25 = vld [vmem:[%s2558_s16 + $0x2e8] sm:$0xff]  ;;  %v692_v61 = vadd.f32 %v2595_v19, %v547_v59 }
  0xd4   : > { %774 = vst [vmem:[%s2624_s8 + $0x200] sm:$0xff] %v648_v26  ;;  %775 = vst [vmem:[%s2624_s8 + $0x208] sm:$0xff] %v649_v32  ;;  %v533_v26 = vld [vmem:[%s2558_s16 + $0x2f0] sm:$0xff]  ;;  %v676_v30 = vadd.f32 %v2595_v19, %v531_v24  ;;  %v677_v31 = vadd.f32 %v2597_v20, %v532_v25  ;;  %v965_v47 = vrot.slane %v2581_v6, %v2863_v18  ;;  %v548_v60 = vld [vmem:[%s2558_s16 + $0x368] sm:$0xff] }
  0xd5   : > { %776 = vst [vmem:[%s2624_s8 + $0x210] sm:$0xff] %v650_v33  ;;  %777 = vst [vmem:[%s2624_s8 + $0x218] sm:$0xff] %v651_v34  ;;  %v678_v32 = vadd.f32 %v2595_v19, %v533_v26  ;;  %v534_v33 = vld [vmem:[%s2558_s16 + $0x2f8] sm:$0xff]  ;;  %v535_v34 = vld [vmem:[%s2558_s16 + $0x300] sm:$0xff]  ;;  %v2954_v17 = vrot.slane %v969_v54, %v2863_v18 }
  0xd6   : > { %778 = vst [vmem:[%s2624_s8 + $0x220] sm:$0xff] %v652_v38  ;;  %779 = vst [vmem:[%s2624_s8 + $0x228] sm:$0xff] %v653_v39  ;;  %v679_v1 = vadd.f32 %v2597_v20, %v534_v33  ;;  %v680_v36 = vadd.f32 %v2595_v19, %v535_v34  ;;  %v537_v38 = vld [vmem:[%s2558_s16 + $0x310] sm:$0xff]  ;;  %v538_v39 = vld [vmem:[%s2558_s16 + $0x318] sm:$0xff]  ;;  %v2942_v10 = vrot.slane %v965_v47, %v2863_v18 }
  0xd7   : > { %780 = vst [vmem:[%s2624_s8 + $0x230] sm:$0xff] %v654_v40  ;;  %781 = vst [vmem:[%s2624_s8 + $0x238] sm:$0xff] %v655_v44  ;;  %v539_v40 = vld [vmem:[%s2558_s16 + $0x320] sm:$0xff]  ;;  %v682_v41 = vadd.f32 %v2595_v19, %v537_v38  ;;  %v683_v42 = vadd.f32 %v2597_v20, %v538_v39  ;;  %v540_v44 = vld [vmem:[%s2558_s16 + $0x328] sm:$0xff] }
  0xd8   : > { %782 = vst [vmem:[%s2624_s8 + $0x240] sm:$0xff] %v656_v45  ;;  %783 = vst [vmem:[%s2624_s8 + $0x248] sm:$0xff] %v657_v46  ;;  %v684_v43 = vadd.f32 %v2595_v19, %v539_v40  ;;  %v541_v45 = vld [vmem:[%s2558_s16 + $0x330] sm:$0xff]  ;;  %v542_v46 = vld [vmem:[%s2558_s16 + $0x338] sm:$0xff]  ;;  %v685_v48 = vadd.f32 %v2597_v20, %v540_v44 }
  0xd9   : > { %784 = vst [vmem:[%s2624_s8 + $0x250] sm:$0xff] %v658_v50  ;;  %785 = vst [vmem:[%s2624_s8 + $0x258] sm:$0xff] %v659_v51  ;;  %v686_v49 = vadd.f32 %v2595_v19, %v541_v45  ;;  %v687_v50 = vadd.f32 %v2597_v20, %v542_v46  ;;  %v543_v51 = vld [vmem:[%s2558_s16 + $0x340] sm:$0xff]  ;;  %v554_v9 = vld [vmem:[%s2558_s16 + $0x398] sm:$0xff] }
  0xda   : > { %786 = vst [vmem:[%s2624_s8 + $0x260] sm:$0xff] %v660_v52  ;;  %787 = vst [vmem:[%s2624_s8 + $0x268] sm:$0xff] %v661_v56  ;;  %v544_v52 = vld [vmem:[%s2558_s16 + $0x348] sm:$0xff]  ;;  %v688_v55 = vadd.f32 %v2595_v19, %v543_v51  ;;  %v551_v2 = vld [vmem:[%s2558_s16 + $0x380] sm:$0xff] }
  0xdb   : > { %788 = vst [vmem:[%s2624_s8 + $0x270] sm:$0xff] %v662_v57  ;;  %789 = vst [vmem:[%s2624_s8 + $0x278] sm:$0xff] %v663_v58  ;;  %v689_v56 = vadd.f32 %v2597_v20, %v544_v52  ;;  %v690_v57 = vadd.f32 %v2595_v19, %v545_v53  ;;  %v546_v58 = vld [vmem:[%s2558_s16 + $0x358] sm:$0xff]  ;;  %v556_v15 = vld [vmem:[%s2558_s16 + $0x3a8] sm:$0xff] }
  0xdc   : > { %790 = vst [vmem:[%s2624_s8 + $0x280] sm:$0xff] %v664_v62  ;;  %791 = vst [vmem:[%s2624_s8 + $0x288] sm:$0xff] %v665_v63  ;;  %v691_v6 = vadd.f32 %v2597_v20, %v546_v58  ;;  %v693_v62 = vadd.f32 %v2597_v20, %v548_v60  ;;  %v549_v63 = vld [vmem:[%s2558_s16 + $0x370] sm:$0xff]  ;;  %v558_v24 = vld [vmem:[%s2558_s16 + $0x3b8] sm:$0xff] }
  0xdd   : > { %792 = vst [vmem:[%s2624_s8 + $0x290] sm:$0xff] %v666_v0  ;;  %793 = vst [vmem:[%s2624_s8 + $0x298] sm:$0xff] %v667_v5  ;;  %v550_v0 = vld [vmem:[%s2558_s16 + $0x378] sm:$0xff]  ;;  %v694_v3 = vadd.f32 %v2595_v19, %v549_v63  ;;  %v696_v5 = vadd.f32 %v2595_v19, %v551_v2  ;;  %v557_v16 = vld [vmem:[%s2558_s16 + $0x3b0] sm:$0xff]  ;;  %v703_v18 = vadd.f32 %v2597_v20, %v558_v24 }
  0xde   : > { %794 = vst [vmem:[%s2624_s8 + $0x2a0] sm:$0xff] %v668_v7  ;;  %795 = vst [vmem:[%s2624_s8 + $0x2a8] sm:$0xff] %v669_v8  ;;  %v695_v4 = vadd.f32 %v2597_v20, %v550_v0  ;;  %v552_v7 = vld [vmem:[%s2558_s16 + $0x388] sm:$0xff]  ;;  %v553_v8 = vld [vmem:[%s2558_s16 + $0x390] sm:$0xff] }
  0xdf   : > { %796 = vst [vmem:[%s2624_s8 + $0x2b0] sm:$0xff] %v670_v12  ;;  %797 = vst [vmem:[%s2624_s8 + $0x2b8] sm:$0xff] %v671_v13  ;;  %v697_v11 = vadd.f32 %v2597_v20, %v552_v7  ;;  %v698_v12 = vadd.f32 %v2595_v19, %v553_v8  ;;  %v699_v13 = vadd.f32 %v2597_v20, %v554_v9  ;;  %v559_v25 = vld [vmem:[%s2558_s16 + $0x3c0] sm:$0xff]  ;;  %v560_v26 = vld [vmem:[%s2558_s16 + $0x3c8] sm:$0xff] }
  0xe0   : > { %798 = vst [vmem:[%s2624_s8 + $0x2c0] sm:$0xff] %v672_v14  ;;  %799 = vst [vmem:[%s2624_s8 + $0x2c8] sm:$0xff] %v673_v21  ;;  %v555_v14 = vld [vmem:[%s2558_s16 + $0x3a0] sm:$0xff]  ;;  %v704_v29 = vadd.f32 %v2595_v19, %v559_v25  ;;  %v837_v38 = vld [vmem:[%s2565_s20 + $0x8] sm:$0xff] }
  0xe1   : > { %800 = vst [vmem:[%s2624_s8 + $0x2d0] sm:$0xff] %v674_v22  ;;  %801 = vst [vmem:[%s2624_s8 + $0x2d8] sm:$0xff] %v675_v23  ;;  %v700_v21 = vadd.f32 %v2595_v19, %v555_v14  ;;  %v701_v22 = vadd.f32 %v2597_v20, %v556_v15  ;;  %v702_v23 = vadd.f32 %v2595_v19, %v557_v16  ;;  %v563_v33 = vld [vmem:[%s2558_s16 + $0x3e0] sm:$0xff]  ;;  %v841_v46 = vld [vmem:[%s2565_s20 + $0x28] sm:$0xff] }
  0xe2   : > { %802 = vst [vmem:[%s2624_s8 + $0x2e0] sm:$0xff] %v676_v30  ;;  %803 = vst [vmem:[%s2624_s8 + $0x2e8] sm:$0xff] %v677_v31  ;;  %v705_v30 = vadd.f32 %v2597_v20, %v560_v26  ;;  %v561_v31 = vld [vmem:[%s2558_s16 + $0x3d0] sm:$0xff]  ;;  %v844_v52 = vld [vmem:[%s2565_s20 + $0x40] sm:$0xff] }
  0xe3   : > { %804 = vst [vmem:[%s2624_s8 + $0x2f0] sm:$0xff] %v678_v32  ;;  %805 = vst [vmem:[%s2624_s8 + $0x2f8] sm:$0xff] %v679_v1  ;;  %v562_v32 = vld [vmem:[%s2558_s16 + $0x3d8] sm:$0xff]  ;;  %v706_v34 = vadd.f32 %v2595_v19, %v561_v31  ;;  %v708_v1 = vadd.f32 %v2595_v19, %v563_v33  ;;  %v840_v19 = vld [vmem:[%s2565_s20 + $0x20] sm:$0xff] }
  0xe4   : > { %806 = vst [vmem:[%s2624_s8 + $0x300] sm:$0xff] %v680_v36  ;;  %807 = vst [vmem:[%s2624_s8 + $0x308] sm:$0xff] %v681_v37  ;;  %v707_v35 = vadd.f32 %v2597_v20, %v562_v32  ;;  %v564_v36 = vld [vmem:[%s2558_s16 + $0x3e8] sm:$0xff]  ;;  %v836_v37 = vld [vmem:[%s2565_s20] sm:$0xff] }
  0xe5   : > { %808 = vst [vmem:[%s2624_s8 + $0x310] sm:$0xff] %v682_v41  ;;  %809 = vst [vmem:[%s2624_s8 + $0x318] sm:$0xff] %v683_v42  ;;  %v709_v39 = vadd.f32 %v2597_v20, %v564_v36  ;;  %v980_v40 = vadd.f32 %v2942_v10, %v836_v37  ;;  %v981_v41 = vadd.f32 %v2954_v17, %v837_v38  ;;  %v838_v42 = vld [vmem:[%s2565_s20 + $0x10] sm:$0xff]  ;;  %v845_v53 = vld [vmem:[%s2565_s20 + $0x48] sm:$0xff] }
  0xe6   : > { %810 = vst [vmem:[%s2624_s8 + $0x320] sm:$0xff] %v684_v43  ;;  %811 = vst [vmem:[%s2624_s8 + $0x328] sm:$0xff] %v685_v48  ;;  %v839_v43 = vld [vmem:[%s2565_s20 + $0x18] sm:$0xff]  ;;  %v982_v44 = vadd.f32 %v2942_v10, %v838_v42  ;;  %v984_v20 = vadd.f32 %v2942_v10, %v840_v19  ;;  %v842_v47 = vld [vmem:[%s2565_s20 + $0x30] sm:$0xff] }
  0xe7   : > { %812 = vst [vmem:[%s2624_s8 + $0x330] sm:$0xff] %v686_v49  ;;  %813 = vst [vmem:[%s2624_s8 + $0x338] sm:$0xff] %v687_v50  ;;  %v983_v45 = vadd.f32 %v2954_v17, %v839_v43  ;;  %v843_v48 = vld [vmem:[%s2565_s20 + $0x38] sm:$0xff]  ;;  %v985_v49 = vadd.f32 %v2954_v17, %v841_v46  ;;  %v986_v50 = vadd.f32 %v2942_v10, %v842_v47  ;;  %v846_v54 = vld [vmem:[%s2565_s20 + $0x50] sm:$0xff] }
  0xe8   : > { %814 = vst [vmem:[%s2624_s8 + $0x340] sm:$0xff] %v688_v55  ;;  %815 = vst [vmem:[%s2624_s8 + $0x348] sm:$0xff] %v689_v56  ;;  %v987_v51 = vadd.f32 %v2954_v17, %v843_v48  ;;  %v988_v55 = vadd.f32 %v2942_v10, %v844_v52  ;;  %v989_v56 = vadd.f32 %v2954_v17, %v845_v53  ;;  %v847_v58 = vld [vmem:[%s2565_s20 + $0x58] sm:$0xff]  ;;  %v848_v59 = vld [vmem:[%s2565_s20 + $0x60] sm:$0xff] }
  0xe9   : > { %816 = vst [vmem:[%s2624_s8 + $0x350] sm:$0xff] %v690_v57  ;;  %817 = vst [vmem:[%s2624_s8 + $0x358] sm:$0xff] %v691_v6  ;;  %v990_v57 = vadd.f32 %v2942_v10, %v846_v54  ;;  %v849_v60 = vld [vmem:[%s2565_s20 + $0x68] sm:$0xff]  ;;  %v991_v6 = vadd.f32 %v2954_v17, %v847_v58  ;;  %v850_v63 = vld [vmem:[%s2565_s20 + $0x70] sm:$0xff] }
  0xea   : > { %818 = vst [vmem:[%s2624_s8 + $0x360] sm:$0xff] %v692_v61  ;;  %819 = vst [vmem:[%s2624_s8 + $0x368] sm:$0xff] %v693_v62  ;;  %v992_v61 = vadd.f32 %v2942_v10, %v848_v59  ;;  %v993_v62 = vadd.f32 %v2954_v17, %v849_v60  ;;  %v851_v0 = vld [vmem:[%s2565_s20 + $0x78] sm:$0xff]  ;;  %v852_v2 = vld [vmem:[%s2565_s20 + $0x80] sm:$0xff] }
  0xeb   : > { %820 = vst [vmem:[%s2624_s8 + $0x370] sm:$0xff] %v694_v3  ;;  %821 = vst [vmem:[%s2624_s8 + $0x378] sm:$0xff] %v695_v4  ;;  %v994_v3 = vadd.f32 %v2942_v10, %v850_v63  ;;  %v995_v4 = vadd.f32 %v2954_v17, %v851_v0  ;;  %v853_v7 = vld [vmem:[%s2565_s20 + $0x88] sm:$0xff]  ;;  %v854_v8 = vld [vmem:[%s2565_s20 + $0x90] sm:$0xff] }
  0xec   : > { %822 = vst [vmem:[%s2624_s8 + $0x380] sm:$0xff] %v696_v5  ;;  %823 = vst [vmem:[%s2624_s8 + $0x388] sm:$0xff] %v697_v11  ;;  %v996_v5 = vadd.f32 %v2942_v10, %v852_v2  ;;  %v855_v9 = vld [vmem:[%s2565_s20 + $0x98] sm:$0xff]  ;;  %v997_v11 = vadd.f32 %v2954_v17, %v853_v7  ;;  %v856_v14 = vld [vmem:[%s2565_s20 + $0xa0] sm:$0xff] }
  0xed   : > { %824 = vst [vmem:[%s2624_s8 + $0x390] sm:$0xff] %v698_v12  ;;  %825 = vst [vmem:[%s2624_s8 + $0x398] sm:$0xff] %v699_v13  ;;  %v998_v12 = vadd.f32 %v2942_v10, %v854_v8  ;;  %v999_v13 = vadd.f32 %v2954_v17, %v855_v9  ;;  %v857_v15 = vld [vmem:[%s2565_s20 + $0xa8] sm:$0xff]  ;;  %v858_v16 = vld [vmem:[%s2565_s20 + $0xb0] sm:$0xff] }
  0xee   : > { %826 = vst [vmem:[%s2624_s8 + $0x3a0] sm:$0xff] %v700_v21  ;;  %827 = vst [vmem:[%s2624_s8 + $0x3a8] sm:$0xff] %v701_v22  ;;  %v1000_v21 = vadd.f32 %v2942_v10, %v856_v14  ;;  %v1001_v22 = vadd.f32 %v2954_v17, %v857_v15  ;;  %v859_v24 = vld [vmem:[%s2565_s20 + $0xb8] sm:$0xff]  ;;  %v860_v25 = vld [vmem:[%s2565_s20 + $0xc0] sm:$0xff] }
  0xef   : > { %828 = vst [vmem:[%s2624_s8 + $0x3b0] sm:$0xff] %v702_v23  ;;  %829 = vst [vmem:[%s2624_s8 + $0x3b8] sm:$0xff] %v703_v18  ;;  %v1002_v23 = vadd.f32 %v2942_v10, %v858_v16  ;;  %v861_v26 = vld [vmem:[%s2565_s20 + $0xc8] sm:$0xff]  ;;  %v1003_v18 = vadd.f32 %v2954_v17, %v859_v24  ;;  %v862_v31 = vld [vmem:[%s2565_s20 + $0xd0] sm:$0xff] }
  0xf0   : > { %830 = vst [vmem:[%s2624_s8 + $0x3c0] sm:$0xff] %v704_v29  ;;  %831 = vst [vmem:[%s2624_s8 + $0x3c8] sm:$0xff] %v705_v30  ;;  %v1004_v29 = vadd.f32 %v2942_v10, %v860_v25  ;;  %v1005_v30 = vadd.f32 %v2954_v17, %v861_v26  ;;  %v863_v32 = vld [vmem:[%s2565_s20 + $0xd8] sm:$0xff]  ;;  %v864_v33 = vld [vmem:[%s2565_s20 + $0xe0] sm:$0xff] }
  0xf1   : > { %832 = vst [vmem:[%s2624_s8 + $0x3d0] sm:$0xff] %v706_v34  ;;  %833 = vst [vmem:[%s2624_s8 + $0x3d8] sm:$0xff] %v707_v35  ;;  %v1006_v34 = vadd.f32 %v2942_v10, %v862_v31  ;;  %v1007_v35 = vadd.f32 %v2954_v17, %v863_v32  ;;  %v865_v36 = vld [vmem:[%s2565_s20 + $0xe8] sm:$0xff]  ;;  %v866_v37 = vld [vmem:[%s2565_s20 + $0xf0] sm:$0xff] }
  0xf2   : > { %834 = vst [vmem:[%s2624_s8 + $0x3e0] sm:$0xff] %v708_v1  ;;  %835 = vst [vmem:[%s2624_s8 + $0x3e8] sm:$0xff] %v709_v39  ;;  %v1008_v1 = vadd.f32 %v2942_v10, %v864_v33  ;;  %v867_v38 = vld [vmem:[%s2565_s20 + $0xf8] sm:$0xff]  ;;  %v1009_v39 = vadd.f32 %v2954_v17, %v865_v36  ;;  %v868_v42 = vld [vmem:[%s2565_s20 + $0x100] sm:$0xff] }
  0xf3   : > { %1106 = vst [vmem:[%s3003_s18] sm:$0xff] %v980_v40  ;;  %1107 = vst [vmem:[%s3003_s18 + $0x8] sm:$0xff] %v981_v41  ;;  %v1010_v40 = vadd.f32 %v2942_v10, %v866_v37  ;;  %v1011_v41 = vadd.f32 %v2954_v17, %v867_v38  ;;  %v869_v43 = vld [vmem:[%s2565_s20 + $0x108] sm:$0xff]  ;;  %v870_v19 = vld [vmem:[%s2565_s20 + $0x110] sm:$0xff] }
  0xf4   : > { %1108 = vst [vmem:[%s3003_s18 + $0x10] sm:$0xff] %v982_v44  ;;  %1109 = vst [vmem:[%s3003_s18 + $0x18] sm:$0xff] %v983_v45  ;;  %v1012_v44 = vadd.f32 %v2942_v10, %v868_v42  ;;  %v1013_v45 = vadd.f32 %v2954_v17, %v869_v43  ;;  %v871_v46 = vld [vmem:[%s2565_s20 + $0x118] sm:$0xff]  ;;  %v872_v47 = vld [vmem:[%s2565_s20 + $0x120] sm:$0xff] }
  0xf5   : > { %1110 = vst [vmem:[%s3003_s18 + $0x20] sm:$0xff] %v984_v20  ;;  %1111 = vst [vmem:[%s3003_s18 + $0x28] sm:$0xff] %v985_v49  ;;  %v1014_v20 = vadd.f32 %v2942_v10, %v870_v19  ;;  %v873_v48 = vld [vmem:[%s2565_s20 + $0x128] sm:$0xff]  ;;  %v1015_v49 = vadd.f32 %v2954_v17, %v871_v46  ;;  %v874_v52 = vld [vmem:[%s2565_s20 + $0x130] sm:$0xff] }
  0xf6   : > { %1112 = vst [vmem:[%s3003_s18 + $0x30] sm:$0xff] %v986_v50  ;;  %1113 = vst [vmem:[%s3003_s18 + $0x38] sm:$0xff] %v987_v51  ;;  %v1016_v50 = vadd.f32 %v2942_v10, %v872_v47  ;;  %v1017_v51 = vadd.f32 %v2954_v17, %v873_v48  ;;  %v875_v53 = vld [vmem:[%s2565_s20 + $0x138] sm:$0xff]  ;;  %v876_v54 = vld [vmem:[%s2565_s20 + $0x140] sm:$0xff] }
  0xf7   : > { %1114 = vst [vmem:[%s3003_s18 + $0x40] sm:$0xff] %v988_v55  ;;  %1115 = vst [vmem:[%s3003_s18 + $0x48] sm:$0xff] %v989_v56  ;;  %v1018_v55 = vadd.f32 %v2942_v10, %v874_v52  ;;  %v1019_v56 = vadd.f32 %v2954_v17, %v875_v53  ;;  %v877_v58 = vld [vmem:[%s2565_s20 + $0x148] sm:$0xff]  ;;  %v878_v59 = vld [vmem:[%s2565_s20 + $0x150] sm:$0xff] }
  0xf8   : > { %1116 = vst [vmem:[%s3003_s18 + $0x50] sm:$0xff] %v990_v57  ;;  %1117 = vst [vmem:[%s3003_s18 + $0x58] sm:$0xff] %v991_v6  ;;  %v1020_v57 = vadd.f32 %v2942_v10, %v876_v54  ;;  %v879_v60 = vld [vmem:[%s2565_s20 + $0x158] sm:$0xff]  ;;  %v1021_v6 = vadd.f32 %v2954_v17, %v877_v58  ;;  %v880_v63 = vld [vmem:[%s2565_s20 + $0x160] sm:$0xff] }
  0xf9   : > { %1118 = vst [vmem:[%s3003_s18 + $0x60] sm:$0xff] %v992_v61  ;;  %1119 = vst [vmem:[%s3003_s18 + $0x68] sm:$0xff] %v993_v62  ;;  %v1022_v61 = vadd.f32 %v2942_v10, %v878_v59  ;;  %v1023_v62 = vadd.f32 %v2954_v17, %v879_v60  ;;  %v881_v0 = vld [vmem:[%s2565_s20 + $0x168] sm:$0xff]  ;;  %v882_v2 = vld [vmem:[%s2565_s20 + $0x170] sm:$0xff] }
  0xfa   : > { %1120 = vst [vmem:[%s3003_s18 + $0x70] sm:$0xff] %v994_v3  ;;  %1121 = vst [vmem:[%s3003_s18 + $0x78] sm:$0xff] %v995_v4  ;;  %v1024_v3 = vadd.f32 %v2942_v10, %v880_v63  ;;  %v1025_v4 = vadd.f32 %v2954_v17, %v881_v0  ;;  %v883_v7 = vld [vmem:[%s2565_s20 + $0x178] sm:$0xff]  ;;  %v884_v8 = vld [vmem:[%s2565_s20 + $0x180] sm:$0xff] }
  0xfb   : > { %1122 = vst [vmem:[%s3003_s18 + $0x80] sm:$0xff] %v996_v5  ;;  %1123 = vst [vmem:[%s3003_s18 + $0x88] sm:$0xff] %v997_v11  ;;  %v1026_v5 = vadd.f32 %v2942_v10, %v882_v2  ;;  %v885_v9 = vld [vmem:[%s2565_s20 + $0x188] sm:$0xff]  ;;  %v1027_v11 = vadd.f32 %v2954_v17, %v883_v7  ;;  %v886_v14 = vld [vmem:[%s2565_s20 + $0x190] sm:$0xff] }
  0xfc   : > { %1124 = vst [vmem:[%s3003_s18 + $0x90] sm:$0xff] %v998_v12  ;;  %1125 = vst [vmem:[%s3003_s18 + $0x98] sm:$0xff] %v999_v13  ;;  %v1028_v12 = vadd.f32 %v2942_v10, %v884_v8  ;;  %v1029_v13 = vadd.f32 %v2954_v17, %v885_v9  ;;  %v887_v15 = vld [vmem:[%s2565_s20 + $0x198] sm:$0xff]  ;;  %v888_v16 = vld [vmem:[%s2565_s20 + $0x1a0] sm:$0xff] }
  0xfd   : > { %1126 = vst [vmem:[%s3003_s18 + $0xa0] sm:$0xff] %v1000_v21  ;;  %1127 = vst [vmem:[%s3003_s18 + $0xa8] sm:$0xff] %v1001_v22  ;;  %v1030_v21 = vadd.f32 %v2942_v10, %v886_v14  ;;  %v1031_v22 = vadd.f32 %v2954_v17, %v887_v15  ;;  %v889_v24 = vld [vmem:[%s2565_s20 + $0x1a8] sm:$0xff]  ;;  %v890_v25 = vld [vmem:[%s2565_s20 + $0x1b0] sm:$0xff] }
  0xfe   : > { %1128 = vst [vmem:[%s3003_s18 + $0xb0] sm:$0xff] %v1002_v23  ;;  %1129 = vst [vmem:[%s3003_s18 + $0xb8] sm:$0xff] %v1003_v18  ;;  %v1032_v23 = vadd.f32 %v2942_v10, %v888_v16  ;;  %v891_v26 = vld [vmem:[%s2565_s20 + $0x1b8] sm:$0xff]  ;;  %v1033_v18 = vadd.f32 %v2954_v17, %v889_v24  ;;  %v892_v31 = vld [vmem:[%s2565_s20 + $0x1c0] sm:$0xff] }
  0xff   : > { %1130 = vst [vmem:[%s3003_s18 + $0xc0] sm:$0xff] %v1004_v29  ;;  %1131 = vst [vmem:[%s3003_s18 + $0xc8] sm:$0xff] %v1005_v30  ;;  %v1034_v29 = vadd.f32 %v2942_v10, %v890_v25  ;;  %v1035_v30 = vadd.f32 %v2954_v17, %v891_v26  ;;  %v893_v32 = vld [vmem:[%s2565_s20 + $0x1c8] sm:$0xff]  ;;  %v894_v33 = vld [vmem:[%s2565_s20 + $0x1d0] sm:$0xff] }
 0x100   : > { %1132 = vst [vmem:[%s3003_s18 + $0xd0] sm:$0xff] %v1006_v34  ;;  %1133 = vst [vmem:[%s3003_s18 + $0xd8] sm:$0xff] %v1007_v35  ;;  %v1036_v34 = vadd.f32 %v2942_v10, %v892_v31  ;;  %v1037_v35 = vadd.f32 %v2954_v17, %v893_v32  ;;  %v895_v36 = vld [vmem:[%s2565_s20 + $0x1d8] sm:$0xff]  ;;  %v896_v37 = vld [vmem:[%s2565_s20 + $0x1e0] sm:$0xff] }
 0x101   : > { %1134 = vst [vmem:[%s3003_s18 + $0xe0] sm:$0xff] %v1008_v1  ;;  %1135 = vst [vmem:[%s3003_s18 + $0xe8] sm:$0xff] %v1009_v39  ;;  %v1038_v1 = vadd.f32 %v2942_v10, %v894_v33  ;;  %v897_v38 = vld [vmem:[%s2565_s20 + $0x1e8] sm:$0xff]  ;;  %v1039_v39 = vadd.f32 %v2954_v17, %v895_v36  ;;  %v898_v42 = vld [vmem:[%s2565_s20 + $0x1f0] sm:$0xff] }
 0x102   : > { %1136 = vst [vmem:[%s3003_s18 + $0xf0] sm:$0xff] %v1010_v40  ;;  %1137 = vst [vmem:[%s3003_s18 + $0xf8] sm:$0xff] %v1011_v41  ;;  %v1040_v40 = vadd.f32 %v2942_v10, %v896_v37  ;;  %v1041_v41 = vadd.f32 %v2954_v17, %v897_v38  ;;  %v899_v43 = vld [vmem:[%s2565_s20 + $0x1f8] sm:$0xff]  ;;  %v900_v19 = vld [vmem:[%s2565_s20 + $0x200] sm:$0xff] }
 0x103   : > { %1138 = vst [vmem:[%s3003_s18 + $0x100] sm:$0xff] %v1012_v44  ;;  %1139 = vst [vmem:[%s3003_s18 + $0x108] sm:$0xff] %v1013_v45  ;;  %v1042_v44 = vadd.f32 %v2942_v10, %v898_v42  ;;  %v1043_v45 = vadd.f32 %v2954_v17, %v899_v43  ;;  %v901_v46 = vld [vmem:[%s2565_s20 + $0x208] sm:$0xff]  ;;  %v902_v47 = vld [vmem:[%s2565_s20 + $0x210] sm:$0xff] }
 0x104   : > { %1140 = vst [vmem:[%s3003_s18 + $0x110] sm:$0xff] %v1014_v20  ;;  %1141 = vst [vmem:[%s3003_s18 + $0x118] sm:$0xff] %v1015_v49  ;;  %v1044_v20 = vadd.f32 %v2942_v10, %v900_v19  ;;  %v903_v48 = vld [vmem:[%s2565_s20 + $0x218] sm:$0xff]  ;;  %v1045_v49 = vadd.f32 %v2954_v17, %v901_v46  ;;  %v904_v52 = vld [vmem:[%s2565_s20 + $0x220] sm:$0xff] }
 0x105   : > { %1142 = vst [vmem:[%s3003_s18 + $0x120] sm:$0xff] %v1016_v50  ;;  %1143 = vst [vmem:[%s3003_s18 + $0x128] sm:$0xff] %v1017_v51  ;;  %v1046_v50 = vadd.f32 %v2942_v10, %v902_v47  ;;  %v1047_v51 = vadd.f32 %v2954_v17, %v903_v48  ;;  %v905_v53 = vld [vmem:[%s2565_s20 + $0x228] sm:$0xff]  ;;  %v906_v54 = vld [vmem:[%s2565_s20 + $0x230] sm:$0xff] }
 0x106   : > { %1144 = vst [vmem:[%s3003_s18 + $0x130] sm:$0xff] %v1018_v55  ;;  %1145 = vst [vmem:[%s3003_s18 + $0x138] sm:$0xff] %v1019_v56  ;;  %v1048_v55 = vadd.f32 %v2942_v10, %v904_v52  ;;  %v1049_v56 = vadd.f32 %v2954_v17, %v905_v53  ;;  %v907_v58 = vld [vmem:[%s2565_s20 + $0x238] sm:$0xff]  ;;  %v908_v59 = vld [vmem:[%s2565_s20 + $0x240] sm:$0xff] }
 0x107   : > { %1146 = vst [vmem:[%s3003_s18 + $0x140] sm:$0xff] %v1020_v57  ;;  %1147 = vst [vmem:[%s3003_s18 + $0x148] sm:$0xff] %v1021_v6  ;;  %v1050_v57 = vadd.f32 %v2942_v10, %v906_v54  ;;  %v909_v60 = vld [vmem:[%s2565_s20 + $0x248] sm:$0xff]  ;;  %v1051_v6 = vadd.f32 %v2954_v17, %v907_v58  ;;  %v910_v63 = vld [vmem:[%s2565_s20 + $0x250] sm:$0xff] }
 0x108   : > { %1148 = vst [vmem:[%s3003_s18 + $0x150] sm:$0xff] %v1022_v61  ;;  %1149 = vst [vmem:[%s3003_s18 + $0x158] sm:$0xff] %v1023_v62  ;;  %v1052_v61 = vadd.f32 %v2942_v10, %v908_v59  ;;  %v1053_v62 = vadd.f32 %v2954_v17, %v909_v60  ;;  %v911_v0 = vld [vmem:[%s2565_s20 + $0x258] sm:$0xff]  ;;  %v912_v2 = vld [vmem:[%s2565_s20 + $0x260] sm:$0xff] }
 0x109   : > { %1150 = vst [vmem:[%s3003_s18 + $0x160] sm:$0xff] %v1024_v3  ;;  %1151 = vst [vmem:[%s3003_s18 + $0x168] sm:$0xff] %v1025_v4  ;;  %v1054_v3 = vadd.f32 %v2942_v10, %v910_v63  ;;  %v1055_v4 = vadd.f32 %v2954_v17, %v911_v0  ;;  %v913_v7 = vld [vmem:[%s2565_s20 + $0x268] sm:$0xff]  ;;  %v914_v8 = vld [vmem:[%s2565_s20 + $0x270] sm:$0xff] }
 0x10a   : > { %1152 = vst [vmem:[%s3003_s18 + $0x170] sm:$0xff] %v1026_v5  ;;  %1153 = vst [vmem:[%s3003_s18 + $0x178] sm:$0xff] %v1027_v11  ;;  %v1056_v5 = vadd.f32 %v2942_v10, %v912_v2  ;;  %v915_v9 = vld [vmem:[%s2565_s20 + $0x278] sm:$0xff]  ;;  %v1057_v11 = vadd.f32 %v2954_v17, %v913_v7  ;;  %v916_v14 = vld [vmem:[%s2565_s20 + $0x280] sm:$0xff] }
 0x10b   : > { %1154 = vst [vmem:[%s3003_s18 + $0x180] sm:$0xff] %v1028_v12  ;;  %1155 = vst [vmem:[%s3003_s18 + $0x188] sm:$0xff] %v1029_v13  ;;  %v1058_v12 = vadd.f32 %v2942_v10, %v914_v8  ;;  %v1059_v13 = vadd.f32 %v2954_v17, %v915_v9  ;;  %v917_v15 = vld [vmem:[%s2565_s20 + $0x288] sm:$0xff]  ;;  %v918_v16 = vld [vmem:[%s2565_s20 + $0x290] sm:$0xff] }
 0x10c   : > { %1156 = vst [vmem:[%s3003_s18 + $0x190] sm:$0xff] %v1030_v21  ;;  %1157 = vst [vmem:[%s3003_s18 + $0x198] sm:$0xff] %v1031_v22  ;;  %v1060_v21 = vadd.f32 %v2942_v10, %v916_v14  ;;  %v1061_v22 = vadd.f32 %v2954_v17, %v917_v15  ;;  %v919_v24 = vld [vmem:[%s2565_s20 + $0x298] sm:$0xff]  ;;  %v920_v25 = vld [vmem:[%s2565_s20 + $0x2a0] sm:$0xff] }
 0x10d   : > { %1158 = vst [vmem:[%s3003_s18 + $0x1a0] sm:$0xff] %v1032_v23  ;;  %1159 = vst [vmem:[%s3003_s18 + $0x1a8] sm:$0xff] %v1033_v18  ;;  %v1062_v23 = vadd.f32 %v2942_v10, %v918_v16  ;;  %v921_v26 = vld [vmem:[%s2565_s20 + $0x2a8] sm:$0xff]  ;;  %v1063_v18 = vadd.f32 %v2954_v17, %v919_v24  ;;  %v922_v31 = vld [vmem:[%s2565_s20 + $0x2b0] sm:$0xff] }
 0x10e   : > { %1160 = vst [vmem:[%s3003_s18 + $0x1b0] sm:$0xff] %v1034_v29  ;;  %1161 = vst [vmem:[%s3003_s18 + $0x1b8] sm:$0xff] %v1035_v30  ;;  %v1064_v29 = vadd.f32 %v2942_v10, %v920_v25  ;;  %v1065_v30 = vadd.f32 %v2954_v17, %v921_v26  ;;  %v923_v32 = vld [vmem:[%s2565_s20 + $0x2b8] sm:$0xff]  ;;  %v924_v33 = vld [vmem:[%s2565_s20 + $0x2c0] sm:$0xff] }
 0x10f   : > { %1162 = vst [vmem:[%s3003_s18 + $0x1c0] sm:$0xff] %v1036_v34  ;;  %1163 = vst [vmem:[%s3003_s18 + $0x1c8] sm:$0xff] %v1037_v35  ;;  %v1066_v34 = vadd.f32 %v2942_v10, %v922_v31  ;;  %v1067_v35 = vadd.f32 %v2954_v17, %v923_v32  ;;  %v925_v36 = vld [vmem:[%s2565_s20 + $0x2c8] sm:$0xff]  ;;  %v926_v37 = vld [vmem:[%s2565_s20 + $0x2d0] sm:$0xff] }
 0x110   : > { %1164 = vst [vmem:[%s3003_s18 + $0x1d0] sm:$0xff] %v1038_v1  ;;  %1165 = vst [vmem:[%s3003_s18 + $0x1d8] sm:$0xff] %v1039_v39  ;;  %v1068_v1 = vadd.f32 %v2942_v10, %v924_v33  ;;  %v927_v38 = vld [vmem:[%s2565_s20 + $0x2d8] sm:$0xff]  ;;  %v1069_v39 = vadd.f32 %v2954_v17, %v925_v36  ;;  %v928_v42 = vld [vmem:[%s2565_s20 + $0x2e0] sm:$0xff] }
 0x111   : > { %1166 = vst [vmem:[%s3003_s18 + $0x1e0] sm:$0xff] %v1040_v40  ;;  %1167 = vst [vmem:[%s3003_s18 + $0x1e8] sm:$0xff] %v1041_v41  ;;  %v1070_v40 = vadd.f32 %v2942_v10, %v926_v37  ;;  %v1071_v41 = vadd.f32 %v2954_v17, %v927_v38  ;;  %v929_v43 = vld [vmem:[%s2565_s20 + $0x2e8] sm:$0xff]  ;;  %v930_v19 = vld [vmem:[%s2565_s20 + $0x2f0] sm:$0xff] }
 0x112   : > { %1168 = vst [vmem:[%s3003_s18 + $0x1f0] sm:$0xff] %v1042_v44  ;;  %1169 = vst [vmem:[%s3003_s18 + $0x1f8] sm:$0xff] %v1043_v45  ;;  %v1072_v44 = vadd.f32 %v2942_v10, %v928_v42  ;;  %v1073_v45 = vadd.f32 %v2954_v17, %v929_v43  ;;  %v931_v46 = vld [vmem:[%s2565_s20 + $0x2f8] sm:$0xff]  ;;  %v932_v47 = vld [vmem:[%s2565_s20 + $0x300] sm:$0xff] }
 0x113   : > { %1170 = vst [vmem:[%s3003_s18 + $0x200] sm:$0xff] %v1044_v20  ;;  %1171 = vst [vmem:[%s3003_s18 + $0x208] sm:$0xff] %v1045_v49  ;;  %v1074_v20 = vadd.f32 %v2942_v10, %v930_v19  ;;  %v933_v48 = vld [vmem:[%s2565_s20 + $0x308] sm:$0xff]  ;;  %v1075_v49 = vadd.f32 %v2954_v17, %v931_v46  ;;  %v934_v52 = vld [vmem:[%s2565_s20 + $0x310] sm:$0xff] }
 0x114   : > { %1172 = vst [vmem:[%s3003_s18 + $0x210] sm:$0xff] %v1046_v50  ;;  %1173 = vst [vmem:[%s3003_s18 + $0x218] sm:$0xff] %v1047_v51  ;;  %v1076_v50 = vadd.f32 %v2942_v10, %v932_v47  ;;  %v1077_v51 = vadd.f32 %v2954_v17, %v933_v48  ;;  %v935_v53 = vld [vmem:[%s2565_s20 + $0x318] sm:$0xff]  ;;  %v936_v54 = vld [vmem:[%s2565_s20 + $0x320] sm:$0xff] }
 0x115   : > { %1174 = vst [vmem:[%s3003_s18 + $0x220] sm:$0xff] %v1048_v55  ;;  %1175 = vst [vmem:[%s3003_s18 + $0x228] sm:$0xff] %v1049_v56  ;;  %v1078_v55 = vadd.f32 %v2942_v10, %v934_v52  ;;  %v1079_v56 = vadd.f32 %v2954_v17, %v935_v53  ;;  %v937_v58 = vld [vmem:[%s2565_s20 + $0x328] sm:$0xff]  ;;  %v938_v59 = vld [vmem:[%s2565_s20 + $0x330] sm:$0xff] }
 0x116   : > { %1176 = vst [vmem:[%s3003_s18 + $0x230] sm:$0xff] %v1050_v57  ;;  %1177 = vst [vmem:[%s3003_s18 + $0x238] sm:$0xff] %v1051_v6  ;;  %v1080_v57 = vadd.f32 %v2942_v10, %v936_v54  ;;  %v939_v60 = vld [vmem:[%s2565_s20 + $0x338] sm:$0xff]  ;;  %v1081_v6 = vadd.f32 %v2954_v17, %v937_v58  ;;  %v940_v63 = vld [vmem:[%s2565_s20 + $0x340] sm:$0xff] }
 0x117   : > { %1178 = vst [vmem:[%s3003_s18 + $0x240] sm:$0xff] %v1052_v61  ;;  %1179 = vst [vmem:[%s3003_s18 + $0x248] sm:$0xff] %v1053_v62  ;;  %v1082_v61 = vadd.f32 %v2942_v10, %v938_v59  ;;  %v1083_v62 = vadd.f32 %v2954_v17, %v939_v60  ;;  %v941_v0 = vld [vmem:[%s2565_s20 + $0x348] sm:$0xff]  ;;  %v942_v2 = vld [vmem:[%s2565_s20 + $0x350] sm:$0xff] }
 0x118   : > { %1180 = vst [vmem:[%s3003_s18 + $0x250] sm:$0xff] %v1054_v3  ;;  %1181 = vst [vmem:[%s3003_s18 + $0x258] sm:$0xff] %v1055_v4  ;;  %v1084_v3 = vadd.f32 %v2942_v10, %v940_v63  ;;  %v1085_v4 = vadd.f32 %v2954_v17, %v941_v0  ;;  %v943_v7 = vld [vmem:[%s2565_s20 + $0x358] sm:$0xff]  ;;  %v944_v8 = vld [vmem:[%s2565_s20 + $0x360] sm:$0xff] }
 0x119   : > { %1182 = vst [vmem:[%s3003_s18 + $0x260] sm:$0xff] %v1056_v5  ;;  %1183 = vst [vmem:[%s3003_s18 + $0x268] sm:$0xff] %v1057_v11  ;;  %v1086_v5 = vadd.f32 %v2942_v10, %v942_v2  ;;  %v945_v9 = vld [vmem:[%s2565_s20 + $0x368] sm:$0xff]  ;;  %v1087_v11 = vadd.f32 %v2954_v17, %v943_v7  ;;  %v946_v14 = vld [vmem:[%s2565_s20 + $0x370] sm:$0xff] }
 0x11a   : > { %1184 = vst [vmem:[%s3003_s18 + $0x270] sm:$0xff] %v1058_v12  ;;  %1185 = vst [vmem:[%s3003_s18 + $0x278] sm:$0xff] %v1059_v13  ;;  %v1088_v12 = vadd.f32 %v2942_v10, %v944_v8  ;;  %v1089_v13 = vadd.f32 %v2954_v17, %v945_v9  ;;  %v947_v15 = vld [vmem:[%s2565_s20 + $0x378] sm:$0xff]  ;;  %v948_v16 = vld [vmem:[%s2565_s20 + $0x380] sm:$0xff] }
 0x11b   : > { %1186 = vst [vmem:[%s3003_s18 + $0x280] sm:$0xff] %v1060_v21  ;;  %1187 = vst [vmem:[%s3003_s18 + $0x288] sm:$0xff] %v1061_v22  ;;  %v1090_v21 = vadd.f32 %v2942_v10, %v946_v14  ;;  %v1091_v22 = vadd.f32 %v2954_v17, %v947_v15  ;;  %v949_v24 = vld [vmem:[%s2565_s20 + $0x388] sm:$0xff]  ;;  %v950_v25 = vld [vmem:[%s2565_s20 + $0x390] sm:$0xff] }
 0x11c   : > { %1188 = vst [vmem:[%s3003_s18 + $0x290] sm:$0xff] %v1062_v23  ;;  %1189 = vst [vmem:[%s3003_s18 + $0x298] sm:$0xff] %v1063_v18  ;;  %v1092_v23 = vadd.f32 %v2942_v10, %v948_v16  ;;  %v951_v26 = vld [vmem:[%s2565_s20 + $0x398] sm:$0xff]  ;;  %v1093_v18 = vadd.f32 %v2954_v17, %v949_v24  ;;  %v952_v31 = vld [vmem:[%s2565_s20 + $0x3a0] sm:$0xff] }
 0x11d   : > { %1190 = vst [vmem:[%s3003_s18 + $0x2a0] sm:$0xff] %v1064_v29  ;;  %1191 = vst [vmem:[%s3003_s18 + $0x2a8] sm:$0xff] %v1065_v30  ;;  %v1094_v29 = vadd.f32 %v2942_v10, %v950_v25  ;;  %v1095_v30 = vadd.f32 %v2954_v17, %v951_v26  ;;  %v953_v32 = vld [vmem:[%s2565_s20 + $0x3a8] sm:$0xff]  ;;  %v954_v33 = vld [vmem:[%s2565_s20 + $0x3b0] sm:$0xff] }
 0x11e   : > { %1192 = vst [vmem:[%s3003_s18 + $0x2b0] sm:$0xff] %v1066_v34  ;;  %1193 = vst [vmem:[%s3003_s18 + $0x2b8] sm:$0xff] %v1067_v35  ;;  %v1096_v34 = vadd.f32 %v2942_v10, %v952_v31  ;;  %v1097_v35 = vadd.f32 %v2954_v17, %v953_v32  ;;  %v955_v36 = vld [vmem:[%s2565_s20 + $0x3b8] sm:$0xff]  ;;  %v956_v37 = vld [vmem:[%s2565_s20 + $0x3c0] sm:$0xff] }
 0x11f   : > { %1194 = vst [vmem:[%s3003_s18 + $0x2c0] sm:$0xff] %v1068_v1  ;;  %1195 = vst [vmem:[%s3003_s18 + $0x2c8] sm:$0xff] %v1069_v39  ;;  %v1098_v1 = vadd.f32 %v2942_v10, %v954_v33  ;;  %v957_v38 = vld [vmem:[%s2565_s20 + $0x3c8] sm:$0xff]  ;;  %v1099_v39 = vadd.f32 %v2954_v17, %v955_v36  ;;  %v958_v42 = vld [vmem:[%s2565_s20 + $0x3d0] sm:$0xff] }
 0x120   : > { %1196 = vst [vmem:[%s3003_s18 + $0x2d0] sm:$0xff] %v1070_v40  ;;  %1197 = vst [vmem:[%s3003_s18 + $0x2d8] sm:$0xff] %v1071_v41  ;;  %v1100_v40 = vadd.f32 %v2942_v10, %v956_v37  ;;  %v1101_v41 = vadd.f32 %v2954_v17, %v957_v38  ;;  %v959_v43 = vld [vmem:[%s2565_s20 + $0x3d8] sm:$0xff]  ;;  %v960_v19 = vld [vmem:[%s2565_s20 + $0x3e0] sm:$0xff] }
 0x121   : > { %1198 = vst [vmem:[%s3003_s18 + $0x2e0] sm:$0xff] %v1072_v44  ;;  %1199 = vst [vmem:[%s3003_s18 + $0x2e8] sm:$0xff] %v1073_v45  ;;  %v1102_v44 = vadd.f32 %v2942_v10, %v958_v42  ;;  %v1103_v45 = vadd.f32 %v2954_v17, %v959_v43  ;;  %v961_v46 = vld [vmem:[%s2565_s20 + $0x3e8] sm:$0xff]  ;;  %v1232_v47 = vld [vmem:[%s2569_s15] sm:$0xff] }
 0x122   : > { %1200 = vst [vmem:[%s3003_s18 + $0x2f0] sm:$0xff] %v1074_v20  ;;  %1201 = vst [vmem:[%s3003_s18 + $0x2f8] sm:$0xff] %v1075_v49  ;;  %v1104_v20 = vadd.f32 %v2942_v10, %v960_v19  ;;  %v1233_v48 = vld [vmem:[%s2569_s15 + $0x8] sm:$0xff]  ;;  %v1105_v49 = vadd.f32 %v2954_v17, %v961_v46  ;;  %v1234_v52 = vld [vmem:[%s2569_s15 + $0x10] sm:$0xff] }
 0x123   : > { %1202 = vst [vmem:[%s3003_s18 + $0x300] sm:$0xff] %v1076_v50  ;;  %1203 = vst [vmem:[%s3003_s18 + $0x308] sm:$0xff] %v1077_v51  ;;  %v1376_v50 = vadd.f32 %v2605_v27, %v1232_v47  ;;  %v1377_v51 = vadd.f32 %v2607_v28, %v1233_v48  ;;  %v1235_v53 = vld [vmem:[%s2569_s15 + $0x18] sm:$0xff]  ;;  %v1236_v10 = vld [vmem:[%s2569_s15 + $0x20] sm:$0xff]  ;;  %v1378_v54 = vadd.f32 %v2605_v27, %v1234_v52 }
 0x124   : > { %1204 = vst [vmem:[%s3003_s18 + $0x310] sm:$0xff] %v1078_v55  ;;  %1205 = vst [vmem:[%s3003_s18 + $0x318] sm:$0xff] %v1079_v56  ;;  %v1379_v55 = vadd.f32 %v2607_v28, %v1235_v53  ;;  %v1380_v17 = vadd.f32 %v2605_v27, %v1236_v10  ;;  %v1237_v56 = vld [vmem:[%s2569_s15 + $0x28] sm:$0xff]  ;;  %v1239_v58 = vld [vmem:[%s2569_s15 + $0x38] sm:$0xff] }
 0x125   : > { %1206 = vst [vmem:[%s3003_s18 + $0x320] sm:$0xff] %v1080_v57  ;;  %1207 = vst [vmem:[%s3003_s18 + $0x328] sm:$0xff] %v1081_v6  ;;  %v1238_v57 = vld [vmem:[%s2569_s15 + $0x30] sm:$0xff]  ;;  %v1381_v59 = vadd.f32 %v2607_v28, %v1237_v56  ;;  %v1383_v6 = vadd.f32 %v2607_v28, %v1239_v58  ;;  %v1245_v7 = vld [vmem:[%s2569_s15 + $0x68] sm:$0xff] }
 0x126   : > { %1208 = vst [vmem:[%s3003_s18 + $0x330] sm:$0xff] %v1082_v61  ;;  %1209 = vst [vmem:[%s3003_s18 + $0x338] sm:$0xff] %v1083_v62  ;;  %v1382_v60 = vadd.f32 %v2605_v27, %v1238_v57  ;;  %v1240_v61 = vld [vmem:[%s2569_s15 + $0x40] sm:$0xff]  ;;  %v1241_v62 = vld [vmem:[%s2569_s15 + $0x48] sm:$0xff] }
 0x127   : > { %1210 = vst [vmem:[%s3003_s18 + $0x340] sm:$0xff] %v1084_v3  ;;  %1211 = vst [vmem:[%s3003_s18 + $0x348] sm:$0xff] %v1085_v4  ;;  %v1242_v63 = vld [vmem:[%s2569_s15 + $0x50] sm:$0xff]  ;;  %v1384_v0 = vadd.f32 %v2605_v27, %v1240_v61  ;;  %v1385_v2 = vadd.f32 %v2607_v28, %v1241_v62  ;;  %v1243_v4 = vld [vmem:[%s2569_s15 + $0x58] sm:$0xff] }
 0x128   : > { %1212 = vst [vmem:[%s3003_s18 + $0x350] sm:$0xff] %v1086_v5  ;;  %1213 = vst [vmem:[%s3003_s18 + $0x358] sm:$0xff] %v1087_v11  ;;  %v1386_v3 = vadd.f32 %v2605_v27, %v1242_v63  ;;  %v1244_v5 = vld [vmem:[%s2569_s15 + $0x60] sm:$0xff]  ;;  %v1387_v8 = vadd.f32 %v2607_v28, %v1243_v4  ;;  %v1389_v11 = vadd.f32 %v2607_v28, %v1245_v7  ;;  %v1251_v24 = vld [vmem:[%s2569_s15 + $0x98] sm:$0xff] }
 0x129   : > { %1214 = vst [vmem:[%s3003_s18 + $0x360] sm:$0xff] %v1088_v12  ;;  %1215 = vst [vmem:[%s3003_s18 + $0x368] sm:$0xff] %v1089_v13  ;;  %v1388_v9 = vadd.f32 %v2605_v27, %v1244_v5  ;;  %v1246_v12 = vld [vmem:[%s2569_s15 + $0x70] sm:$0xff]  ;;  %v1247_v13 = vld [vmem:[%s2569_s15 + $0x78] sm:$0xff] }
 0x12a   : > { %1216 = vst [vmem:[%s3003_s18 + $0x370] sm:$0xff] %v1090_v21  ;;  %1217 = vst [vmem:[%s3003_s18 + $0x378] sm:$0xff] %v1091_v22  ;;  %v1248_v14 = vld [vmem:[%s2569_s15 + $0x80] sm:$0xff]  ;;  %v1390_v15 = vadd.f32 %v2605_v27, %v1246_v12  ;;  %v1391_v16 = vadd.f32 %v2607_v28, %v1247_v13  ;;  %v1249_v22 = vld [vmem:[%s2569_s15 + $0x88] sm:$0xff] }
 0x12b   : > { %1218 = vst [vmem:[%s3003_s18 + $0x380] sm:$0xff] %v1092_v23  ;;  %1219 = vst [vmem:[%s3003_s18 + $0x388] sm:$0xff] %v1093_v18  ;;  %v1392_v21 = vadd.f32 %v2605_v27, %v1248_v14  ;;  %v1250_v23 = vld [vmem:[%s2569_s15 + $0x90] sm:$0xff]  ;;  %v1393_v25 = vadd.f32 %v2607_v28, %v1249_v22  ;;  %v1395_v18 = vadd.f32 %v2607_v28, %v1251_v24  ;;  %v1257_v36 = vld [vmem:[%s2569_s15 + $0xc8] sm:$0xff] }
 0x12c   : > { %1220 = vst [vmem:[%s3003_s18 + $0x390] sm:$0xff] %v1094_v29  ;;  %1221 = vst [vmem:[%s3003_s18 + $0x398] sm:$0xff] %v1095_v30  ;;  %v1394_v26 = vadd.f32 %v2605_v27, %v1250_v23  ;;  %v1252_v29 = vld [vmem:[%s2569_s15 + $0xa0] sm:$0xff]  ;;  %v1253_v30 = vld [vmem:[%s2569_s15 + $0xa8] sm:$0xff] }
 0x12d   : > { %1222 = vst [vmem:[%s3003_s18 + $0x3a0] sm:$0xff] %v1096_v34  ;;  %1223 = vst [vmem:[%s3003_s18 + $0x3a8] sm:$0xff] %v1097_v35  ;;  %v1254_v31 = vld [vmem:[%s2569_s15 + $0xb0] sm:$0xff]  ;;  %v1396_v32 = vadd.f32 %v2605_v27, %v1252_v29  ;;  %v1397_v33 = vadd.f32 %v2607_v28, %v1253_v30  ;;  %v1255_v35 = vld [vmem:[%s2569_s15 + $0xb8] sm:$0xff] }
 0x12e   : > { %1224 = vst [vmem:[%s3003_s18 + $0x3b0] sm:$0xff] %v1098_v1  ;;  %1225 = vst [vmem:[%s3003_s18 + $0x3b8] sm:$0xff] %v1099_v39  ;;  %v1398_v34 = vadd.f32 %v2605_v27, %v1254_v31  ;;  %v1256_v1 = vld [vmem:[%s2569_s15 + $0xc0] sm:$0xff]  ;;  %v1399_v37 = vadd.f32 %v2607_v28, %v1255_v35  ;;  %v1401_v39 = vadd.f32 %v2607_v28, %v1257_v36  ;;  %v1263_v46 = vld [vmem:[%s2569_s15 + $0xf8] sm:$0xff] }
 0x12f   : > { %1226 = vst [vmem:[%s3003_s18 + $0x3c0] sm:$0xff] %v1100_v40  ;;  %1227 = vst [vmem:[%s3003_s18 + $0x3c8] sm:$0xff] %v1101_v41  ;;  %v1400_v38 = vadd.f32 %v2605_v27, %v1256_v1  ;;  %v1258_v40 = vld [vmem:[%s2569_s15 + $0xd0] sm:$0xff]  ;;  %v1259_v41 = vld [vmem:[%s2569_s15 + $0xd8] sm:$0xff] }
 0x130   : > { %1228 = vst [vmem:[%s3003_s18 + $0x3d0] sm:$0xff] %v1102_v44  ;;  %1229 = vst [vmem:[%s3003_s18 + $0x3d8] sm:$0xff] %v1103_v45  ;;  %v1260_v42 = vld [vmem:[%s2569_s15 + $0xe0] sm:$0xff]  ;;  %v1402_v43 = vadd.f32 %v2605_v27, %v1258_v40  ;;  %v1403_v19 = vadd.f32 %v2607_v28, %v1259_v41  ;;  %v1261_v45 = vld [vmem:[%s2569_s15 + $0xe8] sm:$0xff] }
 0x131   : > { %1230 = vst [vmem:[%s3003_s18 + $0x3e0] sm:$0xff] %v1104_v20  ;;  %1231 = vst [vmem:[%s3003_s18 + $0x3e8] sm:$0xff] %v1105_v49  ;;  %v1404_v44 = vadd.f32 %v2605_v27, %v1260_v42  ;;  %v1262_v20 = vld [vmem:[%s2569_s15 + $0xf0] sm:$0xff]  ;;  %v1405_v47 = vadd.f32 %v2607_v28, %v1261_v45  ;;  %v1407_v49 = vadd.f32 %v2607_v28, %v1263_v46  ;;  %v1269_v56 = vld [vmem:[%s2569_s15 + $0x128] sm:$0xff] }
 0x132   : > { %1502 = vst [vmem:[%s3384_s19] sm:$0xff] %v1376_v50  ;;  %1503 = vst [vmem:[%s3384_s19 + $0x8] sm:$0xff] %v1377_v51  ;;  %v1406_v48 = vadd.f32 %v2605_v27, %v1262_v20  ;;  %v1264_v50 = vld [vmem:[%s2569_s15 + $0x100] sm:$0xff]  ;;  %v1265_v51 = vld [vmem:[%s2569_s15 + $0x108] sm:$0xff] }
 0x133   : > { %1504 = vst [vmem:[%s3384_s19 + $0x10] sm:$0xff] %v1378_v54  ;;  %1505 = vst [vmem:[%s3384_s19 + $0x18] sm:$0xff] %v1379_v55  ;;  %v1266_v52 = vld [vmem:[%s2569_s15 + $0x110] sm:$0xff]  ;;  %v1408_v53 = vadd.f32 %v2605_v27, %v1264_v50  ;;  %v1409_v10 = vadd.f32 %v2607_v28, %v1265_v51  ;;  %v1267_v55 = vld [vmem:[%s2569_s15 + $0x118] sm:$0xff] }
 0x134   : > { %1506 = vst [vmem:[%s3384_s19 + $0x20] sm:$0xff] %v1380_v17  ;;  %1507 = vst [vmem:[%s3384_s19 + $0x28] sm:$0xff] %v1381_v59  ;;  %v1410_v54 = vadd.f32 %v2605_v27, %v1266_v52  ;;  %v1268_v17 = vld [vmem:[%s2569_s15 + $0x120] sm:$0xff]  ;;  %v1411_v57 = vadd.f32 %v2607_v28, %v1267_v55  ;;  %v1413_v59 = vadd.f32 %v2607_v28, %v1269_v56  ;;  %v1275_v4 = vld [vmem:[%s2569_s15 + $0x158] sm:$0xff] }
 0x135   : > { %1508 = vst [vmem:[%s3384_s19 + $0x30] sm:$0xff] %v1382_v60  ;;  %1509 = vst [vmem:[%s3384_s19 + $0x38] sm:$0xff] %v1383_v6  ;;  %v1412_v58 = vadd.f32 %v2605_v27, %v1268_v17  ;;  %v1270_v60 = vld [vmem:[%s2569_s15 + $0x130] sm:$0xff]  ;;  %v1271_v6 = vld [vmem:[%s2569_s15 + $0x138] sm:$0xff] }
 0x136   : > { %1510 = vst [vmem:[%s3384_s19 + $0x40] sm:$0xff] %v1384_v0  ;;  %1511 = vst [vmem:[%s3384_s19 + $0x48] sm:$0xff] %v1385_v2  ;;  %v1272_v61 = vld [vmem:[%s2569_s15 + $0x140] sm:$0xff]  ;;  %v1414_v62 = vadd.f32 %v2605_v27, %v1270_v60  ;;  %v1415_v63 = vadd.f32 %v2607_v28, %v1271_v6  ;;  %v1273_v2 = vld [vmem:[%s2569_s15 + $0x148] sm:$0xff] }
 0x137   : > { %1512 = vst [vmem:[%s3384_s19 + $0x50] sm:$0xff] %v1386_v3  ;;  %1513 = vst [vmem:[%s3384_s19 + $0x58] sm:$0xff] %v1387_v8  ;;  %v1416_v0 = vadd.f32 %v2605_v27, %v1272_v61  ;;  %v1274_v3 = vld [vmem:[%s2569_s15 + $0x150] sm:$0xff]  ;;  %v1417_v5 = vadd.f32 %v2607_v28, %v1273_v2  ;;  %v1419_v8 = vadd.f32 %v2607_v28, %v1275_v4  ;;  %v1281_v22 = vld [vmem:[%s2569_s15 + $0x188] sm:$0xff] }
 0x138   : > { %1514 = vst [vmem:[%s3384_s19 + $0x60] sm:$0xff] %v1388_v9  ;;  %1515 = vst [vmem:[%s3384_s19 + $0x68] sm:$0xff] %v1389_v11  ;;  %v1418_v7 = vadd.f32 %v2605_v27, %v1274_v3  ;;  %v1276_v9 = vld [vmem:[%s2569_s15 + $0x160] sm:$0xff]  ;;  %v1277_v11 = vld [vmem:[%s2569_s15 + $0x168] sm:$0xff] }
 0x139   : > { %1516 = vst [vmem:[%s3384_s19 + $0x70] sm:$0xff] %v1390_v15  ;;  %1517 = vst [vmem:[%s3384_s19 + $0x78] sm:$0xff] %v1391_v16  ;;  %v1278_v12 = vld [vmem:[%s2569_s15 + $0x170] sm:$0xff]  ;;  %v1420_v13 = vadd.f32 %v2605_v27, %v1276_v9  ;;  %v1421_v14 = vadd.f32 %v2607_v28, %v1277_v11  ;;  %v1279_v16 = vld [vmem:[%s2569_s15 + $0x178] sm:$0xff] }
 0x13a   : > { %1518 = vst [vmem:[%s3384_s19 + $0x80] sm:$0xff] %v1392_v21  ;;  %1519 = vst [vmem:[%s3384_s19 + $0x88] sm:$0xff] %v1393_v25  ;;  %v1422_v15 = vadd.f32 %v2605_v27, %v1278_v12  ;;  %v1280_v21 = vld [vmem:[%s2569_s15 + $0x180] sm:$0xff]  ;;  %v1423_v23 = vadd.f32 %v2607_v28, %v1279_v16  ;;  %v1425_v25 = vadd.f32 %v2607_v28, %v1281_v22  ;;  %v1287_v35 = vld [vmem:[%s2569_s15 + $0x1b8] sm:$0xff] }
 0x13b   : > { %1520 = vst [vmem:[%s3384_s19 + $0x90] sm:$0xff] %v1394_v26  ;;  %1521 = vst [vmem:[%s3384_s19 + $0x98] sm:$0xff] %v1395_v18  ;;  %v1424_v24 = vadd.f32 %v2605_v27, %v1280_v21  ;;  %v1282_v26 = vld [vmem:[%s2569_s15 + $0x190] sm:$0xff]  ;;  %v1283_v18 = vld [vmem:[%s2569_s15 + $0x198] sm:$0xff] }
 0x13c   : > { %1522 = vst [vmem:[%s3384_s19 + $0xa0] sm:$0xff] %v1396_v32  ;;  %1523 = vst [vmem:[%s3384_s19 + $0xa8] sm:$0xff] %v1397_v33  ;;  %v1284_v29 = vld [vmem:[%s2569_s15 + $0x1a0] sm:$0xff]  ;;  %v1426_v30 = vadd.f32 %v2605_v27, %v1282_v26  ;;  %v1427_v31 = vadd.f32 %v2607_v28, %v1283_v18  ;;  %v1285_v33 = vld [vmem:[%s2569_s15 + $0x1a8] sm:$0xff] }
 0x13d   : > { %1524 = vst [vmem:[%s3384_s19 + $0xb0] sm:$0xff] %v1398_v34  ;;  %1525 = vst [vmem:[%s3384_s19 + $0xb8] sm:$0xff] %v1399_v37  ;;  %v1428_v32 = vadd.f32 %v2605_v27, %v1284_v29  ;;  %v1286_v34 = vld [vmem:[%s2569_s15 + $0x1b0] sm:$0xff]  ;;  %v1429_v1 = vadd.f32 %v2607_v28, %v1285_v33  ;;  %v1431_v37 = vadd.f32 %v2607_v28, %v1287_v35  ;;  %v1293_v45 = vld [vmem:[%s2569_s15 + $0x1e8] sm:$0xff] }
 0x13e   : > { %1526 = vst [vmem:[%s3384_s19 + $0xc0] sm:$0xff] %v1400_v38  ;;  %1527 = vst [vmem:[%s3384_s19 + $0xc8] sm:$0xff] %v1401_v39  ;;  %v1430_v36 = vadd.f32 %v2605_v27, %v1286_v34  ;;  %v1288_v38 = vld [vmem:[%s2569_s15 + $0x1c0] sm:$0xff]  ;;  %v1289_v39 = vld [vmem:[%s2569_s15 + $0x1c8] sm:$0xff] }
 0x13f   : > { %1528 = vst [vmem:[%s3384_s19 + $0xd0] sm:$0xff] %v1402_v43  ;;  %1529 = vst [vmem:[%s3384_s19 + $0xd8] sm:$0xff] %v1403_v19  ;;  %v1290_v40 = vld [vmem:[%s2569_s15 + $0x1d0] sm:$0xff]  ;;  %v1432_v41 = vadd.f32 %v2605_v27, %v1288_v38  ;;  %v1433_v42 = vadd.f32 %v2607_v28, %v1289_v39  ;;  %v1291_v19 = vld [vmem:[%s2569_s15 + $0x1d8] sm:$0xff] }
 0x140   : > { %1530 = vst [vmem:[%s3384_s19 + $0xe0] sm:$0xff] %v1404_v44  ;;  %1531 = vst [vmem:[%s3384_s19 + $0xe8] sm:$0xff] %v1405_v47  ;;  %v1434_v43 = vadd.f32 %v2605_v27, %v1290_v40  ;;  %v1292_v44 = vld [vmem:[%s2569_s15 + $0x1e0] sm:$0xff]  ;;  %v1435_v20 = vadd.f32 %v2607_v28, %v1291_v19  ;;  %v1437_v47 = vadd.f32 %v2607_v28, %v1293_v45  ;;  %v1299_v55 = vld [vmem:[%s2569_s15 + $0x218] sm:$0xff] }
 0x141   : > { %1532 = vst [vmem:[%s3384_s19 + $0xf0] sm:$0xff] %v1406_v48  ;;  %1533 = vst [vmem:[%s3384_s19 + $0xf8] sm:$0xff] %v1407_v49  ;;  %v1436_v46 = vadd.f32 %v2605_v27, %v1292_v44  ;;  %v1294_v48 = vld [vmem:[%s2569_s15 + $0x1f0] sm:$0xff]  ;;  %v1295_v49 = vld [vmem:[%s2569_s15 + $0x1f8] sm:$0xff] }
 0x142   : > { %1534 = vst [vmem:[%s3384_s19 + $0x100] sm:$0xff] %v1408_v53  ;;  %1535 = vst [vmem:[%s3384_s19 + $0x108] sm:$0xff] %v1409_v10  ;;  %v1296_v50 = vld [vmem:[%s2569_s15 + $0x200] sm:$0xff]  ;;  %v1438_v51 = vadd.f32 %v2605_v27, %v1294_v48  ;;  %v1439_v52 = vadd.f32 %v2607_v28, %v1295_v49  ;;  %v1297_v10 = vld [vmem:[%s2569_s15 + $0x208] sm:$0xff] }
 0x143   : > { %1536 = vst [vmem:[%s3384_s19 + $0x110] sm:$0xff] %v1410_v54  ;;  %1537 = vst [vmem:[%s3384_s19 + $0x118] sm:$0xff] %v1411_v57  ;;  %v1440_v53 = vadd.f32 %v2605_v27, %v1296_v50  ;;  %v1298_v54 = vld [vmem:[%s2569_s15 + $0x210] sm:$0xff]  ;;  %v1441_v17 = vadd.f32 %v2607_v28, %v1297_v10  ;;  %v1443_v57 = vadd.f32 %v2607_v28, %v1299_v55  ;;  %v1305_v2 = vld [vmem:[%s2569_s15 + $0x248] sm:$0xff] }
 0x144   : > { %1538 = vst [vmem:[%s3384_s19 + $0x120] sm:$0xff] %v1412_v58  ;;  %1539 = vst [vmem:[%s3384_s19 + $0x128] sm:$0xff] %v1413_v59  ;;  %v1442_v56 = vadd.f32 %v2605_v27, %v1298_v54  ;;  %v1300_v58 = vld [vmem:[%s2569_s15 + $0x220] sm:$0xff]  ;;  %v1301_v59 = vld [vmem:[%s2569_s15 + $0x228] sm:$0xff] }
 0x145   : > { %1540 = vst [vmem:[%s3384_s19 + $0x130] sm:$0xff] %v1414_v62  ;;  %1541 = vst [vmem:[%s3384_s19 + $0x138] sm:$0xff] %v1415_v63  ;;  %v1302_v60 = vld [vmem:[%s2569_s15 + $0x230] sm:$0xff]  ;;  %v1444_v6 = vadd.f32 %v2605_v27, %v1300_v58  ;;  %v1445_v61 = vadd.f32 %v2607_v28, %v1301_v59  ;;  %v1303_v63 = vld [vmem:[%s2569_s15 + $0x238] sm:$0xff] }
 0x146   : > { %1542 = vst [vmem:[%s3384_s19 + $0x140] sm:$0xff] %v1416_v0  ;;  %1543 = vst [vmem:[%s3384_s19 + $0x148] sm:$0xff] %v1417_v5  ;;  %v1446_v62 = vadd.f32 %v2605_v27, %v1302_v60  ;;  %v1304_v0 = vld [vmem:[%s2569_s15 + $0x240] sm:$0xff]  ;;  %v1447_v3 = vadd.f32 %v2607_v28, %v1303_v63  ;;  %v1449_v5 = vadd.f32 %v2607_v28, %v1305_v2  ;;  %v1311_v16 = vld [vmem:[%s2569_s15 + $0x278] sm:$0xff] }
 0x147   : > { %1544 = vst [vmem:[%s3384_s19 + $0x150] sm:$0xff] %v1418_v7  ;;  %1545 = vst [vmem:[%s3384_s19 + $0x158] sm:$0xff] %v1419_v8  ;;  %v1448_v4 = vadd.f32 %v2605_v27, %v1304_v0  ;;  %v1306_v7 = vld [vmem:[%s2569_s15 + $0x250] sm:$0xff]  ;;  %v1307_v8 = vld [vmem:[%s2569_s15 + $0x258] sm:$0xff] }
 0x148   : > { %1546 = vst [vmem:[%s3384_s19 + $0x160] sm:$0xff] %v1420_v13  ;;  %1547 = vst [vmem:[%s3384_s19 + $0x168] sm:$0xff] %v1421_v14  ;;  %v1308_v9 = vld [vmem:[%s2569_s15 + $0x260] sm:$0xff]  ;;  %v1450_v11 = vadd.f32 %v2605_v27, %v1306_v7  ;;  %v1451_v12 = vadd.f32 %v2607_v28, %v1307_v8  ;;  %v1309_v14 = vld [vmem:[%s2569_s15 + $0x268] sm:$0xff] }
 0x149   : > { %1548 = vst [vmem:[%s3384_s19 + $0x170] sm:$0xff] %v1422_v15  ;;  %1549 = vst [vmem:[%s3384_s19 + $0x178] sm:$0xff] %v1423_v23  ;;  %v1452_v13 = vadd.f32 %v2605_v27, %v1308_v9  ;;  %v1310_v15 = vld [vmem:[%s2569_s15 + $0x270] sm:$0xff]  ;;  %v1453_v21 = vadd.f32 %v2607_v28, %v1309_v14  ;;  %v1455_v23 = vadd.f32 %v2607_v28, %v1311_v16  ;;  %v1317_v33 = vld [vmem:[%s2569_s15 + $0x2a8] sm:$0xff] }
 0x14a   : > { %1550 = vst [vmem:[%s3384_s19 + $0x180] sm:$0xff] %v1424_v24  ;;  %1551 = vst [vmem:[%s3384_s19 + $0x188] sm:$0xff] %v1425_v25  ;;  %v1454_v22 = vadd.f32 %v2605_v27, %v1310_v15  ;;  %v1312_v24 = vld [vmem:[%s2569_s15 + $0x280] sm:$0xff]  ;;  %v1313_v25 = vld [vmem:[%s2569_s15 + $0x288] sm:$0xff] }
 0x14b   : > { %1552 = vst [vmem:[%s3384_s19 + $0x190] sm:$0xff] %v1426_v30  ;;  %1553 = vst [vmem:[%s3384_s19 + $0x198] sm:$0xff] %v1427_v31  ;;  %v1314_v26 = vld [vmem:[%s2569_s15 + $0x290] sm:$0xff]  ;;  %v1456_v18 = vadd.f32 %v2605_v27, %v1312_v24  ;;  %v1457_v29 = vadd.f32 %v2607_v28, %v1313_v25  ;;  %v1315_v31 = vld [vmem:[%s2569_s15 + $0x298] sm:$0xff] }
 0x14c   : > { %1554 = vst [vmem:[%s3384_s19 + $0x1a0] sm:$0xff] %v1428_v32  ;;  %1555 = vst [vmem:[%s3384_s19 + $0x1a8] sm:$0xff] %v1429_v1  ;;  %v1458_v30 = vadd.f32 %v2605_v27, %v1314_v26  ;;  %v1316_v32 = vld [vmem:[%s2569_s15 + $0x2a0] sm:$0xff]  ;;  %v1459_v34 = vadd.f32 %v2607_v28, %v1315_v31  ;;  %v1461_v1 = vadd.f32 %v2607_v28, %v1317_v33  ;;  %v1323_v19 = vld [vmem:[%s2569_s15 + $0x2d8] sm:$0xff] }
 0x14d   : > { %1556 = vst [vmem:[%s3384_s19 + $0x1b0] sm:$0xff] %v1430_v36  ;;  %1557 = vst [vmem:[%s3384_s19 + $0x1b8] sm:$0xff] %v1431_v37  ;;  %v1460_v35 = vadd.f32 %v2605_v27, %v1316_v32  ;;  %v1318_v36 = vld [vmem:[%s2569_s15 + $0x2b0] sm:$0xff]  ;;  %v1319_v37 = vld [vmem:[%s2569_s15 + $0x2b8] sm:$0xff] }
 0x14e   : > { %1558 = vst [vmem:[%s3384_s19 + $0x1c0] sm:$0xff] %v1432_v41  ;;  %1559 = vst [vmem:[%s3384_s19 + $0x1c8] sm:$0xff] %v1433_v42  ;;  %v1320_v38 = vld [vmem:[%s2569_s15 + $0x2c0] sm:$0xff]  ;;  %v1462_v39 = vadd.f32 %v2605_v27, %v1318_v36  ;;  %v1463_v40 = vadd.f32 %v2607_v28, %v1319_v37  ;;  %v1321_v42 = vld [vmem:[%s2569_s15 + $0x2c8] sm:$0xff] }
 0x14f   : > { %1560 = vst [vmem:[%s3384_s19 + $0x1d0] sm:$0xff] %v1434_v43  ;;  %1561 = vst [vmem:[%s3384_s19 + $0x1d8] sm:$0xff] %v1435_v20  ;;  %v1464_v41 = vadd.f32 %v2605_v27, %v1320_v38  ;;  %v1322_v43 = vld [vmem:[%s2569_s15 + $0x2d0] sm:$0xff]  ;;  %v1465_v44 = vadd.f32 %v2607_v28, %v1321_v42  ;;  %v1467_v20 = vadd.f32 %v2607_v28, %v1323_v19  ;;  %v1329_v10 = vld [vmem:[%s2569_s15 + $0x308] sm:$0xff] }
 0x150   : > { %1562 = vst [vmem:[%s3384_s19 + $0x1e0] sm:$0xff] %v1436_v46  ;;  %1563 = vst [vmem:[%s3384_s19 + $0x1e8] sm:$0xff] %v1437_v47  ;;  %v1466_v45 = vadd.f32 %v2605_v27, %v1322_v43  ;;  %v1324_v46 = vld [vmem:[%s2569_s15 + $0x2e0] sm:$0xff]  ;;  %v1325_v47 = vld [vmem:[%s2569_s15 + $0x2e8] sm:$0xff] }
 0x151   : > { %1564 = vst [vmem:[%s3384_s19 + $0x1f0] sm:$0xff] %v1438_v51  ;;  %1565 = vst [vmem:[%s3384_s19 + $0x1f8] sm:$0xff] %v1439_v52  ;;  %v1326_v48 = vld [vmem:[%s2569_s15 + $0x2f0] sm:$0xff]  ;;  %v1468_v49 = vadd.f32 %v2605_v27, %v1324_v46  ;;  %v1469_v50 = vadd.f32 %v2607_v28, %v1325_v47  ;;  %v1327_v52 = vld [vmem:[%s2569_s15 + $0x2f8] sm:$0xff] }
 0x152   : > { %1566 = vst [vmem:[%s3384_s19 + $0x200] sm:$0xff] %v1440_v53  ;;  %1567 = vst [vmem:[%s3384_s19 + $0x208] sm:$0xff] %v1441_v17  ;;  %v1470_v51 = vadd.f32 %v2605_v27, %v1326_v48  ;;  %v1328_v53 = vld [vmem:[%s2569_s15 + $0x300] sm:$0xff]  ;;  %v1471_v54 = vadd.f32 %v2607_v28, %v1327_v52  ;;  %v1473_v17 = vadd.f32 %v2607_v28, %v1329_v10  ;;  %v1335_v63 = vld [vmem:[%s2569_s15 + $0x338] sm:$0xff] }
 0x153   : > { %1568 = vst [vmem:[%s3384_s19 + $0x210] sm:$0xff] %v1442_v56  ;;  %1569 = vst [vmem:[%s3384_s19 + $0x218] sm:$0xff] %v1443_v57  ;;  %v1472_v55 = vadd.f32 %v2605_v27, %v1328_v53  ;;  %v1330_v56 = vld [vmem:[%s2569_s15 + $0x310] sm:$0xff]  ;;  %v1331_v57 = vld [vmem:[%s2569_s15 + $0x318] sm:$0xff] }
 0x154   : > { %1570 = vst [vmem:[%s3384_s19 + $0x220] sm:$0xff] %v1444_v6  ;;  %1571 = vst [vmem:[%s3384_s19 + $0x228] sm:$0xff] %v1445_v61  ;;  %v1332_v58 = vld [vmem:[%s2569_s15 + $0x320] sm:$0xff]  ;;  %v1474_v59 = vadd.f32 %v2605_v27, %v1330_v56  ;;  %v1475_v60 = vadd.f32 %v2607_v28, %v1331_v57  ;;  %v1333_v61 = vld [vmem:[%s2569_s15 + $0x328] sm:$0xff] }
 0x155   : > { %1572 = vst [vmem:[%s3384_s19 + $0x230] sm:$0xff] %v1446_v62  ;;  %1573 = vst [vmem:[%s3384_s19 + $0x238] sm:$0xff] %v1447_v3  ;;  %v1476_v6 = vadd.f32 %v2605_v27, %v1332_v58  ;;  %v1334_v62 = vld [vmem:[%s2569_s15 + $0x330] sm:$0xff]  ;;  %v1477_v0 = vadd.f32 %v2607_v28, %v1333_v61  ;;  %v1479_v3 = vadd.f32 %v2607_v28, %v1335_v63  ;;  %v1341_v14 = vld [vmem:[%s2569_s15 + $0x368] sm:$0xff] }
 0x156   : > { %1574 = vst [vmem:[%s3384_s19 + $0x240] sm:$0xff] %v1448_v4  ;;  %1575 = vst [vmem:[%s3384_s19 + $0x248] sm:$0xff] %v1449_v5  ;;  %v1478_v2 = vadd.f32 %v2605_v27, %v1334_v62  ;;  %v1336_v4 = vld [vmem:[%s2569_s15 + $0x340] sm:$0xff]  ;;  %v1337_v5 = vld [vmem:[%s2569_s15 + $0x348] sm:$0xff] }
 0x157   : > { %1576 = vst [vmem:[%s3384_s19 + $0x250] sm:$0xff] %v1450_v11  ;;  %1577 = vst [vmem:[%s3384_s19 + $0x258] sm:$0xff] %v1451_v12  ;;  %v1338_v7 = vld [vmem:[%s2569_s15 + $0x350] sm:$0xff]  ;;  %v1480_v8 = vadd.f32 %v2605_v27, %v1336_v4  ;;  %v1481_v9 = vadd.f32 %v2607_v28, %v1337_v5  ;;  %v1339_v12 = vld [vmem:[%s2569_s15 + $0x358] sm:$0xff] }
 0x158   : > { %1578 = vst [vmem:[%s3384_s19 + $0x260] sm:$0xff] %v1452_v13  ;;  %1579 = vst [vmem:[%s3384_s19 + $0x268] sm:$0xff] %v1453_v21  ;;  %v1482_v11 = vadd.f32 %v2605_v27, %v1338_v7  ;;  %v1340_v13 = vld [vmem:[%s2569_s15 + $0x360] sm:$0xff]  ;;  %v1483_v15 = vadd.f32 %v2607_v28, %v1339_v12  ;;  %v1485_v21 = vadd.f32 %v2607_v28, %v1341_v14  ;;  %v1347_v31 = vld [vmem:[%s2569_s15 + $0x398] sm:$0xff] }
 0x159   : > { %1580 = vst [vmem:[%s3384_s19 + $0x270] sm:$0xff] %v1454_v22  ;;  %1581 = vst [vmem:[%s3384_s19 + $0x278] sm:$0xff] %v1455_v23  ;;  %v1484_v16 = vadd.f32 %v2605_v27, %v1340_v13  ;;  %v1342_v22 = vld [vmem:[%s2569_s15 + $0x370] sm:$0xff]  ;;  %v1343_v23 = vld [vmem:[%s2569_s15 + $0x378] sm:$0xff] }
 0x15a   : > { %1582 = vst [vmem:[%s3384_s19 + $0x280] sm:$0xff] %v1456_v18  ;;  %1583 = vst [vmem:[%s3384_s19 + $0x288] sm:$0xff] %v1457_v29  ;;  %v1344_v24 = vld [vmem:[%s2569_s15 + $0x380] sm:$0xff]  ;;  %v1486_v25 = vadd.f32 %v2605_v27, %v1342_v22  ;;  %v1487_v26 = vadd.f32 %v2607_v28, %v1343_v23  ;;  %v1345_v29 = vld [vmem:[%s2569_s15 + $0x388] sm:$0xff] }
 0x15b   : > { %1584 = vst [vmem:[%s3384_s19 + $0x290] sm:$0xff] %v1458_v30  ;;  %1585 = vst [vmem:[%s3384_s19 + $0x298] sm:$0xff] %v1459_v34  ;;  %v1488_v18 = vadd.f32 %v2605_v27, %v1344_v24  ;;  %v1346_v30 = vld [vmem:[%s2569_s15 + $0x390] sm:$0xff]  ;;  %v1489_v32 = vadd.f32 %v2607_v28, %v1345_v29  ;;  %v1491_v34 = vadd.f32 %v2607_v28, %v1347_v31  ;;  %v1353_v42 = vld [vmem:[%s2569_s15 + $0x3c8] sm:$0xff] }
 0x15c   : > { %1586 = vst [vmem:[%s3384_s19 + $0x2a0] sm:$0xff] %v1460_v35  ;;  %1587 = vst [vmem:[%s3384_s19 + $0x2a8] sm:$0xff] %v1461_v1  ;;  %v1490_v33 = vadd.f32 %v2605_v27, %v1346_v30  ;;  %v1348_v35 = vld [vmem:[%s2569_s15 + $0x3a0] sm:$0xff]  ;;  %v1349_v1 = vld [vmem:[%s2569_s15 + $0x3a8] sm:$0xff] }
 0x15d   : > { %1588 = vst [vmem:[%s3384_s19 + $0x2b0] sm:$0xff] %v1462_v39  ;;  %1589 = vst [vmem:[%s3384_s19 + $0x2b8] sm:$0xff] %v1463_v40  ;;  %v1350_v36 = vld [vmem:[%s2569_s15 + $0x3b0] sm:$0xff]  ;;  %v1492_v37 = vadd.f32 %v2605_v27, %v1348_v35  ;;  %v1493_v38 = vadd.f32 %v2607_v28, %v1349_v1  ;;  %v1351_v40 = vld [vmem:[%s2569_s15 + $0x3b8] sm:$0xff] }
 0x15e   : > { %1590 = vst [vmem:[%s3384_s19 + $0x2c0] sm:$0xff] %v1464_v41  ;;  %1591 = vst [vmem:[%s3384_s19 + $0x2c8] sm:$0xff] %v1465_v44  ;;  %v1494_v39 = vadd.f32 %v2605_v27, %v1350_v36  ;;  %v1352_v41 = vld [vmem:[%s2569_s15 + $0x3c0] sm:$0xff]  ;;  %v1495_v43 = vadd.f32 %v2607_v28, %v1351_v40  ;;  %v1497_v44 = vadd.f32 %v2607_v28, %v1353_v42 }
 0x15f   : > { %1592 = vst [vmem:[%s3384_s19 + $0x2d0] sm:$0xff] %v1466_v45  ;;  %1593 = vst [vmem:[%s3384_s19 + $0x2d8] sm:$0xff] %v1467_v20  ;;  %v1496_v19 = vadd.f32 %v2605_v27, %v1352_v41  ;;  %v1354_v45 = vld [vmem:[%s2569_s15 + $0x3d0] sm:$0xff]  ;;  %v1355_v20 = vld [vmem:[%s2569_s15 + $0x3d8] sm:$0xff] }
 0x160   : > { %1594 = vst [vmem:[%s3384_s19 + $0x2e0] sm:$0xff] %v1468_v49  ;;  %1595 = vst [vmem:[%s3384_s19 + $0x2e8] sm:$0xff] %v1469_v50  ;;  %v1356_v46 = vld [vmem:[%s2569_s15 + $0x3e0] sm:$0xff]  ;;  %v1498_v47 = vadd.f32 %v2605_v27, %v1354_v45  ;;  %v1499_v48 = vadd.f32 %v2607_v28, %v1355_v20  ;;  %v1357_v50 = vld [vmem:[%s2569_s15 + $0x3e8] sm:$0xff] }
 0x161   : > { %1596 = vst [vmem:[%s3384_s19 + $0x2f0] sm:$0xff] %v1470_v51  ;;  %1597 = vst [vmem:[%s3384_s19 + $0x2f8] sm:$0xff] %v1471_v54  ;;  %v1500_v49 = vadd.f32 %v2605_v27, %v1356_v46  ;;  %v1501_v51 = vadd.f32 %v2607_v28, %v1357_v50 }
 0x162   : > { %1598 = vst [vmem:[%s3384_s19 + $0x300] sm:$0xff] %v1472_v55  ;;  %1599 = vst [vmem:[%s3384_s19 + $0x308] sm:$0xff] %v1473_v17 }
 0x163   : > { %1600 = vst [vmem:[%s3384_s19 + $0x310] sm:$0xff] %v1474_v59  ;;  %1601 = vst [vmem:[%s3384_s19 + $0x318] sm:$0xff] %v1475_v60 }
 0x164   : > { %1602 = vst [vmem:[%s3384_s19 + $0x320] sm:$0xff] %v1476_v6  ;;  %1603 = vst [vmem:[%s3384_s19 + $0x328] sm:$0xff] %v1477_v0 }
 0x165   : > { %1604 = vst [vmem:[%s3384_s19 + $0x330] sm:$0xff] %v1478_v2  ;;  %1605 = vst [vmem:[%s3384_s19 + $0x338] sm:$0xff] %v1479_v3 }
 0x166   : > { %1606 = vst [vmem:[%s3384_s19 + $0x340] sm:$0xff] %v1480_v8  ;;  %1607 = vst [vmem:[%s3384_s19 + $0x348] sm:$0xff] %v1481_v9 }
 0x167   : > { %1608 = vst [vmem:[%s3384_s19 + $0x350] sm:$0xff] %v1482_v11  ;;  %1609 = vst [vmem:[%s3384_s19 + $0x358] sm:$0xff] %v1483_v15 }
 0x168   : > { %1610 = vst [vmem:[%s3384_s19 + $0x360] sm:$0xff] %v1484_v16  ;;  %1611 = vst [vmem:[%s3384_s19 + $0x368] sm:$0xff] %v1485_v21 }
 0x169   : > { %1612 = vst [vmem:[%s3384_s19 + $0x370] sm:$0xff] %v1486_v25  ;;  %1613 = vst [vmem:[%s3384_s19 + $0x378] sm:$0xff] %v1487_v26 }
 0x16a   : > { %1614 = vst [vmem:[%s3384_s19 + $0x380] sm:$0xff] %v1488_v18  ;;  %1615 = vst [vmem:[%s3384_s19 + $0x388] sm:$0xff] %v1489_v32 }
 0x16b   : > { %1616 = vst [vmem:[%s3384_s19 + $0x390] sm:$0xff] %v1490_v33  ;;  %1617 = vst [vmem:[%s3384_s19 + $0x398] sm:$0xff] %v1491_v34 }
 0x16c   : > { %1618 = vst [vmem:[%s3384_s19 + $0x3a0] sm:$0xff] %v1492_v37  ;;  %1619 = vst [vmem:[%s3384_s19 + $0x3a8] sm:$0xff] %v1493_v38  ;;  %1645 = sbr.rel (!%p3924_p5) target bundleno = 396 (0x18c), region = 56 }
 0x16d   : > { %1620 = vst [vmem:[%s3384_s19 + $0x3b0] sm:$0xff] %v1494_v39  ;;  %1621 = vst [vmem:[%s3384_s19 + $0x3b8] sm:$0xff] %v1495_v43 }
 0x16e   : > { %1622 = vst [vmem:[%s3384_s19 + $0x3c0] sm:$0xff] %v1496_v19  ;;  %1623 = vst [vmem:[%s3384_s19 + $0x3c8] sm:$0xff] %v1497_v44 }
 0x16f   : > { %1624 = vst [vmem:[%s3384_s19 + $0x3d0] sm:$0xff] %v1498_v47  ;;  %1625 = vst [vmem:[%s3384_s19 + $0x3d8] sm:$0xff] %v1499_v48 }
 0x170   : > { %1626 = vst [vmem:[%s3384_s19 + $0x3e0] sm:$0xff] %v1500_v49  ;;  %1627 = vst [vmem:[%s3384_s19 + $0x3e8] sm:$0xff] %v1501_v51 }
 0x171   : > { %s3941_s13 = smov (!%p1648_p12, %s1647_s13), 63 }
 0x172   : > { %s3759_s17 = sshll.u32 %s3941_s13, 8 }
 0x173   : > { %s1653_s28 = ssub.s32 16128, %s3759_s17 }
 0x174   : > { %1654 = vsyncadd %s1629_s29, %s1653_s28  ;;  %p1926_p1 = scmp.ne.s32.totalorder %s3759_s17, 0  ;;  %s1968_s12 = smul.u32 16128, %s2356_s25 }
 0x175   : > { %s1660_s26 = sshll.u32 %s2624_s8, 4  ;;  %s2291_s15 = smov [#allocation10]   ;;  %s3772_s26 = int_to_ptr.vmem [resolvable:$true] %s1660_s26 }
 0x176   : > { %s3770_s20 = scalar_lea.hbm %s3905_s4, %s1968_s12  ;;  %s2151_s0 = scalar_lea.vmem %s3772_s26, %s3759_s17 }
 0x177   : > { %p2152_p0 = scmp.ne.s32.totalorder %s3772_s26, %s2151_s0  ;;  %s2155_s7 = sshll.u32 %s2291_s15, 4  ;;  %s2156_s7 = int_to_ptr.vmem [resolvable:$false] %s2155_s7 }
 0x178   : > { %s2157_s13 = scalar_lea.vmem %s2156_s7, 32256  ;;  %p2158_p2 = scmp.lt.s32.totalorder %s3772_s26, %s2156_s7 }
 0x179   : > { %p2153_p4 = pnand %p2152_p0, %p1926_p1  ;;  %p2159_p3 = scmp.lt.s32.totalorder %s2157_s13, %s2151_s0 }
 0x17b   : > { %p2154_p11 = pneg %p2153_p4  ;;  %p2160_p7 = por %p2159_p3, %p2158_p2 }
 0x17d   : > { %p2161_p10 = pnand %p2160_p7, %p2154_p11 }
 0x17f   : > { %2164 = shalt.err (!%p2161_p10)
}
 0x180   : > { %s2165_s8 = scalar_lea.hbm %s3770_s20, %s3759_s17  ;;  %s2169_s11 = scalar_lea.hbm %s3905_s4, 32000 }
 0x181   : > { %p2166_p8 = scmp.ne.s32.totalorder %s3770_s20, %s2165_s8  ;;  %p2170_p13 = scmp.lt.s32.totalorder %s3770_s20, %s3905_s4 }
 0x182   : > { %p2171_p5 = scmp.lt.s32.totalorder %s2169_s11, %s2165_s8 }
 0x183   : > { %p2167_p9 = pnand %p2166_p8, %p1926_p1 }
 0x184   : > { %p2172_p12 = por %p2171_p5, %p2170_p13 }
 0x185   : > { %p2168_p6 = pneg %p2167_p9 }
 0x187   : > { %p2173_p0 = pnand %p2172_p12, %p2168_p6 }
 0x189   : > { %2176 = shalt.err (!%p2173_p0)
}
 0x18a   : > { %s2292_s0 = smov 256   ;;  %s2293_s7 = smov 16  }
 0x18b   : > { %1666 = dma.vmem_to_hbm [thread:$0]  (%p1926_p1), %s3772_s26, %s3759_s17, %s3770_s20, %s1629_s29, %s2292_s0, %s2292_s0, %s2293_s7  }
 0x18c PF: > { %p3925_p4 = scmp.ne.s32.totalorder %s3916_s9, 0 }
 0x18d   : > { %s1670_s13 = smul.u32 (%p3925_p4), 63, %s2356_s25 }
 0x18e   : > { %1669 = sbr.rel (!%p3925_p4) target bundleno = 430 (0x1ae), region = 60 }
 0x18f   : > { %s1671_s8 = ssub.s32 (%p3925_p4), 125, %s1670_s13 }
 0x190   : > { %p1672_p11 = scmp.lt.s32.totalorder (%p3925_p4), %s1671_s8, 63 }
 0x193   : > { %s3943_s8 = smov (!%p1672_p11, %s1671_s8), 63 }
 0x194   : > { %s3802_s28 = sshll.u32 %s3943_s8, 8 }
 0x195   : > { %s1677_s12 = ssub.s32 16128, %s3802_s28 }
 0x196   : > { %1678 = vsyncadd %s3754_s1, %s1677_s12  ;;  %p1933_p1 = scmp.ne.s32.totalorder %s3802_s28, 0  ;;  %s1969_s14 = smul.u32 16128, %s2356_s25 }
 0x197   : > { %s1684_s29 = sshll.u32 %s3003_s18, 4  ;;  %s2294_s16 = smov [#allocation11]   ;;  %s3814_s29 = int_to_ptr.vmem [resolvable:$true] %s1684_s29 }
 0x198   : > { %s3812_s20 = scalar_lea.hbm %s3906_s5, %s1969_s14  ;;  %s2177_s11 = scalar_lea.vmem %s3814_s29, %s3802_s28 }
 0x199   : > { %p2178_p2 = scmp.ne.s32.totalorder %s3814_s29, %s2177_s11  ;;  %s2181_s15 = sshll.u32 %s2294_s16, 4  ;;  %s2182_s15 = int_to_ptr.vmem [resolvable:$false] %s2181_s15 }
 0x19a   : > { %s2183_s0 = scalar_lea.vmem %s2182_s15, 32256  ;;  %p2184_p10 = scmp.lt.s32.totalorder %s3814_s29, %s2182_s15 }
 0x19b   : > { %p2179_p3 = pnand %p2178_p2, %p1933_p1  ;;  %p2185_p8 = scmp.lt.s32.totalorder %s2183_s0, %s2177_s11 }
 0x19d   : > { %p2180_p7 = pneg %p2179_p3  ;;  %p2186_p9 = por %p2185_p8, %p2184_p10 }
 0x19f   : > { %p2187_p6 = pnand %p2186_p9, %p2180_p7 }
 0x1a1   : > { %2190 = shalt.err (!%p2187_p6)
}
 0x1a2   : > { %s2191_s18 = scalar_lea.hbm %s3812_s20, %s3802_s28  ;;  %s2195_s8 = scalar_lea.hbm %s3906_s5, 32000 }
 0x1a3   : > { %p2192_p13 = scmp.ne.s32.totalorder %s3812_s20, %s2191_s18  ;;  %p2196_p0 = scmp.lt.s32.totalorder %s3812_s20, %s3906_s5 }
 0x1a4   : > { %p2197_p4 = scmp.lt.s32.totalorder %s2195_s8, %s2191_s18 }
 0x1a5   : > { %p2193_p5 = pnand %p2192_p13, %p1933_p1 }
 0x1a6   : > { %p2198_p11 = por %p2197_p4, %p2196_p0 }
 0x1a7   : > { %p2194_p12 = pneg %p2193_p5 }
 0x1a9   : > { %p2199_p2 = pnand %p2198_p11, %p2194_p12 }
 0x1ab   : > { %2202 = shalt.err (!%p2199_p2)
}
 0x1ac   : > { %s2295_s17 = smov 256   ;;  %s2296_s26 = smov 16  }
 0x1ad   : > { %1690 = dma.vmem_to_hbm [thread:$0]  (%p1933_p1), %s3814_s29, %s3802_s28, %s3812_s20, %s3754_s1, %s2295_s17, %s2295_s17, %s2296_s26  }
 0x1ae PF: > { %p3926_p3 = scmp.ne.s32.totalorder %s3916_s9, 0 }
 0x1af   : > { %s1694_s11 = smul.u32 (%p3926_p3), 63, %s2356_s25 }
 0x1b0   : > { %1693 = sbr.rel (!%p3926_p3) target bundleno = 464 (0x1d0), region = 64 }
 0x1b1   : > { %s1695_s16 = ssub.s32 (%p3926_p3), 125, %s1694_s11 }
 0x1b2   : > { %p1696_p7 = scmp.lt.s32.totalorder (%p3926_p3), %s1695_s16, 63 }
 0x1b5   : > { %s3945_s16 = smov (!%p1696_p7, %s1695_s16), 63 }
 0x1b6   : > { %s3843_s15 = sshll.u32 %s3945_s16, 8 }
 0x1b7   : > { %s1701_s0 = ssub.s32 16128, %s3843_s15 }
 0x1b8   : > { %1702 = vsyncadd %s3754_s1, %s1701_s0  ;;  %p1940_p1 = scmp.ne.s32.totalorder %s3843_s15, 0  ;;  %s1970_s28 = smul.u32 16128, %s2356_s25 }
 0x1b9   : > { %s1708_s9 = sshll.u32 %s3384_s19, 4  ;;  %s2297_s13 = smov [#allocation13]   ;;  %s3855_s9 = int_to_ptr.vmem [resolvable:$true] %s1708_s9 }
 0x1ba   : > { %s3853_s18 = scalar_lea.hbm %s3907_s6, %s1970_s28  ;;  %s2203_s7 = scalar_lea.vmem %s3855_s9, %s3843_s15 }
 0x1bb   : > { %p2204_p10 = scmp.ne.s32.totalorder %s3855_s9, %s2203_s7  ;;  %s2207_s8 = sshll.u32 %s2297_s13, 4  ;;  %s2208_s8 = int_to_ptr.vmem [resolvable:$false] %s2207_s8 }
 0x1bc   : > { %s2209_s25 = scalar_lea.vmem %s2208_s8, 32256  ;;  %p2210_p6 = scmp.lt.s32.totalorder %s3855_s9, %s2208_s8 }
 0x1bd   : > { %p2205_p8 = pnand %p2204_p10, %p1940_p1  ;;  %p2211_p13 = scmp.lt.s32.totalorder %s2209_s25, %s2203_s7 }
 0x1bf   : > { %p2206_p9 = pneg %p2205_p8  ;;  %p2212_p5 = por %p2211_p13, %p2210_p6 }
 0x1c1   : > { %p2213_p12 = pnand %p2212_p5, %p2206_p9 }
 0x1c3   : > { %2216 = shalt.err (!%p2213_p12)
}
 0x1c4   : > { %s2217_s19 = scalar_lea.hbm %s3853_s18, %s3843_s15  ;;  %s2221_s17 = scalar_lea.hbm %s3907_s6, 32000 }
 0x1c5   : > { %p2218_p0 = scmp.ne.s32.totalorder %s3853_s18, %s2217_s19  ;;  %p2222_p2 = scmp.lt.s32.totalorder %s3853_s18, %s3907_s6 }
 0x1c6   : > { %p2223_p3 = scmp.lt.s32.totalorder %s2221_s17, %s2217_s19 }
 0x1c7   : > { %p2219_p4 = pnand %p2218_p0, %p1940_p1 }
 0x1c8   : > { %p2224_p7 = por %p2223_p3, %p2222_p2 }
 0x1c9   : > { %p2220_p11 = pneg %p2219_p4 }
 0x1cb   : > { %p2225_p10 = pnand %p2224_p7, %p2220_p11 }
 0x1cd   : > { %2228 = shalt.err (!%p2225_p10)
}
 0x1ce   : > { %s2298_s16 = smov 256   ;;  %s2299_s0 = smov 16  }
 0x1cf   : > { %1714 = dma.vmem_to_hbm [thread:$0]  (%p1940_p1), %s3855_s9, %s3843_s15, %s3853_s18, %s3754_s1, %s2298_s16, %s2298_s16, %s2299_s0  }
 0x1d0 PF: > { %s1723_s28 = sand.u32 1, %s2267_s21   ;;  %p3927_p8 = scmp.ne.s32.totalorder %s3917_s10, 0 }
 0x1d1   : > { %p3928_p9 = scmp.ge.s32.totalorder %s2279_s24, 2  ;;  %s1724_s29 = scalar_lea.sflag [#allocation4], %s1723_s28 }
 0x1d3   : > { %p1990_p6 = pnand %p3928_p9, %p3927_p8 }
 0x1d5   : > { %p1991_p13 = pneg %p1990_p6 }
 0x1d7   : > { %2258 = dma.done.wait (%p1991_p13), %s1724_s29, 16128  }
 0x1d8   : > { %2260 = vsyncadd (%p1991_p13), %s1724_s29, 4294951168  ;;  %s3929_s20 = sadd.s32 4294967294, %s2279_s24  }
 0x1d9   : > { %s1732_s7 = sand.u32 1, %s3929_s20  }
 0x1da   : > { %s1733_s13 = scalar_lea.sflag [#allocation12], %s1732_s7 }
 0x1db   : > { %2262 = dma.done.wait (%p1991_p13), %s1733_s13, 32256  }
 0x1dc   : > { %2264 = vsyncadd (%p1991_p13), %s1733_s13, 4294935040  ;;  %p27_p1 = scmp.ge.s32.totalorder %s2360_s27, 4   ;;  %s3930_s21 = smov %s2271_s22 }
 0x1dd   : > { %s3931_s22 = smov %s2275_s23  ;;  %s3932_s23 = smov %s2372_s30 }
 0x1de   : > { %s3933_s24 = smov %s2360_s27  ;;  %29 = sbr.rel (!%p27_p1) target bundleno = 13 (0xd), region = 142 }
 0x1e3   :  { %1747 = vsyncpa [#allocation3], 1 }
 0x1e4   :  { %1749 = vsyncpa [#allocation3 + $0x1], 1 }
 0x1e5   :  { %1750 = vsyncpa [#allocation6], 1 }
 0x1e6   :  { %1752 = vsyncpa [#allocation6 + $0x1], 1 }
 0x1e7   :  { %1753 = vsyncpa [#allocation9], 1 }
 0x1e8   :  { %1755 = vsyncpa [#allocation9 + $0x1], 1 }
 0x1e9   :  { %1756 = vsyncpa [#allocation4], 1 }
 0x1ea   :  { %1758 = vsyncpa [#allocation4 + $0x1], 1 }
 0x1eb   :  { %1759 = vsyncpa [#allocation12], 1 }
 0x1ec   :  { %1761 = vsyncpa [#allocation12 + $0x1], 1 }

</bundles_post_ra>
